<compile_context>
chip_gen: v5e
topology: v5e:2x2
jax: 0.10.0
libtpu: 0.0.40
codegen_flags: <defaults>
</compile_context>

<pallas_src>
import jax
import jax.numpy as jnp
from jax.experimental import pallas as pl
from jax.experimental.pallas import tpu as pltpu

LEAKY_SLOPE = 0.2
BN_EPS = 1e-5
_LANE = 128
_MXU_DTYPE = jnp.bfloat16          # MXU operands / slab; accumulation & elementwise f32


def _rup(x, m):
    return -(-x // m) * m


def _vmem_capacity_bytes():
    try:
        return int(pltpu.get_tpu_info().vmem_capacity_bytes)
    except Exception:
        return 64 * 2 ** 20        # conservative fallback (v7x per-TensorCore VMEM)


def _step_vmem_bytes(th, W, Cp):
    """Conservative per-grid-step VMEM working-set estimate for a th-row tile."""
    r16 = _rup(W + 2, 16)          # bf16 sublane-packed padding of slab rows
    r8 = _rup(W, 8)                # f32 sublane padding of output rows
    rows = th * W
    body_io = 2 * th * r16 * Cp * 2          # double-buffered body block (bf16)
    halo_io = 2 * 2 * r16 * Cp * 2           # double-buffered halo block (bf16)
    out_io = 2 * th * r8 * Cp * 4            # double-buffered pass-2 output block (f32)
    w_res = 2 * 9 * Cp * Cp * 2              # resident per-tap weights (bf16)
    xtile = (th + 2) * r16 * Cp * 2          # in-kernel halo-concat tile (bf16)
    acc = rows * Cp * 4                      # f32 conv accumulator
    temps = 2 * rows * Cp * 2 + th * r16 * Cp * 2   # shifted-view temporaries (est.)
    return body_io + halo_io + out_io + w_res + xtile + acc + temps


def _pick_row_block(N, H, W, Cp, budget, min_blocks=8):
    """Largest row-tile TH (divisor of H) fitting the budget; prefer >=8 grid steps."""
    divisors = [t for t in range(1, H + 1) if H % t == 0]
    fits = [t for t in divisors if _step_vmem_bytes(t, W, Cp) <= budget]
    if not fits:
        # TODO(synk): add W-halo tiling for images whose single-row working set exceeds
        # the VMEM budget; the smallest H-tile is the best this scheme can do.
        return 1
    deep = [t for t in fits if N * (H // t) >= min_blocks]
    return max(deep) if deep else max(fits)


def _conv_taps(xtile, w_ref, th, ww):
    """3x3 conv of one padded tile as 9 accumulating K=Cp MXU matmuls (f32 accumulate)."""
    cp = xtile.shape[-1]
    rows = th * ww
    acc = None
    for dy in range(3):
        for dx in range(3):
            tap = xtile[dy:dy + th, dx:dx + ww, :].reshape(rows, cp)
            p = jnp.dot(tap, w_ref[dy * 3 + dx], preferred_element_type=jnp.float32)
            acc = p if acc is None else acc + p
    return acc                                            # (rows, cp) f32


def _make_stats_kernel(th, ww):
    """Pass 1 (stats only): per-tile per-channel sum + mean-shifted sum-of-squares."""
    inv_rows = 1.0 / float(th * ww)

    def kernel(body_ref, halo_ref, w_ref, stats_ref):
        body = body_ref[0]                                # (th, ww+2, Cp) bf16
        cp = body.shape[-1]
        halo = halo_ref[...].reshape(2, ww + 2, cp)       # (2, ww+2, Cp) bf16
        xtile = jnp.concatenate([halo[0:1], body, halo[1:2]], axis=0)
        acc = _conv_taps(xtile, w_ref, th, ww)            # (rows, Cp) f32
        s = jnp.sum(acc, axis=0, keepdims=True)           # (1, Cp) channel sum
        d = acc - s * inv_rows                            # per-tile mean-shifted
        m2 = jnp.sum(d * d, axis=0, keepdims=True)        # (1, Cp) per-tile M2
        stats_ref[...] = jnp.concatenate([s, m2], axis=0)[None, None]

    return kernel


def _make_out_kernel(th, ww):
    """Pass 2: recompute conv, folded BN FMA, LeakyReLU(0.2), residual add."""

    def kernel(body_ref, halo_ref, w_ref, scale_ref, shift_ref, out_ref):
        body = body_ref[0]                                # (th, ww+2, Cp) bf16
        cp = body.shape[-1]
        halo = halo_ref[...].reshape(2, ww + 2, cp)
        xtile = jnp.concatenate([halo[0:1], body, halo[1:2]], axis=0)
        acc = _conv_taps(xtile, w_ref, th, ww)            # (rows, Cp) f32
        y = acc * scale_ref[...] + shift_ref[...]         # folded BN (single FMA)
        y = jnp.where(y > 0, y, LEAKY_SLOPE * y)          # LeakyReLU(0.2)
        resid = body[:, 1:ww + 1, :].reshape(th * ww, cp).astype(jnp.float32)
        out_ref[...] = (y + resid).reshape(1, th, ww, cp).astype(out_ref.dtype)

    return kernel


@jax.jit
def residual_block(x_nchw, w_oihw, b, gamma, beta):
    """Pallas implementation of ResidualBlock.forward. x_nchw: (N, C, H, W)."""
    # The conv bias is exactly cancelled by the train-mode BN mean subtraction that
    # immediately follows the conv -> accepted for interface parity, never used.
    del b
    N, C, H, W = x_nchw.shape
    Cp = _LANE * (-(-C // _LANE))            # lane-dense channel padding
    P = N * H * W

    vmem_cap = _vmem_capacity_bytes()        # generation-aware (v7x 64 MiB vs 128 MiB)
    step_budget = (vmem_cap * 3) // 16       # ~12 MiB on v7x, ~24 MiB on v5e/v6e
    vmem_limit = vmem_cap // 2               # 32 MiB on v7x, 64 MiB on v5e/v6e

    th = _pick_row_block(N, H, W, Cp, step_budget)
    n_hb = H // th
    rows = th * W

    # ---- wrapper layout glue (one fused XLA pass) ----
    # TODO(synk): if the caller can provide/accept NHWC, both transposes disappear.
    x_nhwc = jnp.transpose(x_nchw, (0, 2, 3, 1))
    slab = jnp.pad(x_nhwc, ((0, 0), (0, 0), (1, 1), (0, Cp - C))).astype(_MXU_DTYPE)
    # slab: (N, H, W+2, Cp) bf16 — W-padded, channel-padded, NOT H-padded (no halo dup).

    # Tiny per-tile H-halo rows (row above / below each row-tile; zero at image edges).
    hb_idx = jnp.arange(n_hb)
    top_src = jnp.clip(hb_idx * th - 1, 0, H - 1)
    bot_src = jnp.clip(hb_idx * th + th, 0, H - 1)
    top = jnp.where((hb_idx == 0)[None, :, None, None], 0, slab[:, top_src])
    bot = jnp.where((hb_idx == n_hb - 1)[None, :, None, None], 0, slab[:, bot_src])
    halo = jnp.stack([top, bot], axis=2)                  # (N, n_hb, 2, W+2, Cp) bf16

    # PyTorch OIHW -> (kh, kw, ci, co), zero-padded, one (Cp, Cp) matrix per tap.
    w_taps = jnp.transpose(w_oihw, (2, 3, 1, 0)).astype(jnp.float32)
    w_taps = jnp.pad(w_taps, ((0, 0), (0, 0), (0, Cp - C), (0, Cp - C)))
    w9 = w_taps.reshape(9, Cp, Cp).astype(_MXU_DTYPE)

    cparams = pltpu.CompilerParams(
        dimension_semantics=("parallel", "parallel"),
        vmem_limit_bytes=int(vmem_limit))

    body_spec = pl.BlockSpec((1, th, W + 2, Cp), lambda n, h: (n, h, 0, 0))
    halo_spec = pl.BlockSpec((1, 1, 2, W + 2, Cp), lambda n, h: (n, h, 0, 0, 0))
    w_spec = pl.BlockSpec((9, Cp, Cp), lambda n, h: (0, 0, 0))

    # ---- pass 1: conv (recomputed) -> per-tile BN partial statistics only ----
    stats = pl.pallas_call(
        _make_stats_kernel(th, W),
        out_shape=jax.ShapeDtypeStruct((N, n_hb, 2, Cp), jnp.float32),
        grid=(N, n_hb),
        in_specs=[body_spec, halo_spec, w_spec],
        out_specs=pl.BlockSpec((1, 1, 2, Cp), lambda n, h: (n, h, 0, 0)),
        compiler_params=cparams,
    )(slab, halo, w9)

    # ---- tiny cross-tile combine (equal tile counts) -> folded scale / shift ----
    st = stats.reshape(N * n_hb, 2, Cp)
    tile_mean = st[:, 0, :] / rows
    mean = jnp.mean(tile_mean, axis=0)
    m2 = jnp.sum(st[:, 1, :], axis=0) + rows * jnp.sum((tile_mean - mean) ** 2, axis=0)
    var = m2 / P                                          # biased, train-mode BN
    gamma_p = jnp.pad(gamma.astype(jnp.float32), (0, Cp - C))
    beta_p = jnp.pad(beta.astype(jnp.float32), (0, Cp - C))
    scale = (gamma_p * jax.lax.rsqrt(var + BN_EPS)).reshape(1, Cp)
    shift = (beta_p - mean * scale[0]).reshape(1, Cp)

    # ---- pass 2: recompute conv + folded BN + LeakyReLU + residual ----
    out_nhwc = pl.pallas_call(
        _make_out_kernel(th, W),
        out_shape=jax.ShapeDtypeStruct((N, H, W, Cp), jnp.float32),
        grid=(N, n_hb),
        in_specs=[body_spec, halo_spec, w_spec,
                  pl.BlockSpec((1, Cp), lambda n, h: (0, 0)),
                  pl.BlockSpec((1, Cp), lambda n, h: (0, 0))],
        out_specs=pl.BlockSpec((1, th, W, Cp), lambda n, h: (n, h, 0, 0)),
        compiler_params=cparams,
    )(slab, halo, w9, scale, shift)

    out = out_nhwc[..., :C]
    return jnp.transpose(out, (0, 3, 1, 2)).astype(x_nchw.dtype)


def residual_block_ref(x_nchw, w_oihw, b, gamma, beta):
    """Pure-JAX f32 reference matching the PyTorch module (train-mode BN)."""
    x = x_nchw.astype(jnp.float32)
    y = jax.lax.conv_general_dilated(
        x, w_oihw.astype(jnp.float32), window_strides=(1, 1),
        padding=((1, 1), (1, 1)),
        dimension_numbers=('NCHW', 'OIHW', 'NCHW')) + b[None, :, None, None]
    mean = jnp.mean(y, axis=(0, 2, 3), keepdims=True)
    var = jnp.mean((y - mean) ** 2, axis=(0, 2, 3), keepdims=True)
    y = (y - mean) * jax.lax.rsqrt(var + BN_EPS)
    y = y * gamma[None, :, None, None] + beta[None, :, None, None]
    y = jnp.where(y > 0, y, LEAKY_SLOPE * y)
    return y + x


if __name__ == "__main__":
    key = jax.random.PRNGKey(0)
    kx, kw, kb, kg, kbeta = jax.random.split(key, 5)

    N, C, H, W = 2, 4, 16, 16
    x = jax.random.normal(kx, (N, C, H, W), dtype=jnp.float32)
    w = 0.1 * jax.random.normal(kw, (C, C, 3, 3), dtype=jnp.float32)      # OIHW
    b = 0.1 * jax.random.normal(kb, (C,), dtype=jnp.float32)              # conv bias
    gamma = 1.0 + 0.1 * jax.random.normal(kg, (C,), dtype=jnp.float32)    # BN weight
    beta = 0.1 * jax.random.normal(kbeta, (C,), dtype=jnp.float32)        # BN bias

    out = jax.block_until_ready(residual_block(x, w, b, gamma, beta))
    ref = residual_block_ref(x, w, b, gamma, beta)

    assert out.shape == (N, C, H, W)
    # Tolerance accounts for bf16 MXU operands and the residual being read back from
    # the bf16 slab (f32 accumulation / f32 reference).
    max_err = float(jnp.max(jnp.abs(out - ref)))
    assert jnp.allclose(out, ref, rtol=3e-2, atol=4e-2), f"max abs err {max_err}"

    print("KERNEL_OK")
</pallas_src>

<mosaic_0001>
module attributes {stable_mosaic.version = 11 : i64} {
  func.func @kernel(%arg0: i32, %arg1: i32, %arg2: memref<1x4x18x128xbf16, #tpu.memory_space<vmem>>, %arg3: memref<1x1x2x18x128xbf16, #tpu.memory_space<vmem>>, %arg4: memref<9x128x128xbf16, #tpu.memory_space<vmem>>, %arg5: memref<1x1x2x128xf32, #tpu.memory_space<vmem>>) attributes {dimension_semantics = [#tpu.dimension_semantics<parallel>, #tpu.dimension_semantics<parallel>], iteration_bounds = array<i64: 2, 4>, scalar_prefetch = 0 : i64, scratch_operands = 0 : i64, tpu.core_type = #tpu.core_type<tc>, window_params = [{transform_indices = @transform_0, window_bounds = array<i64: 1, 4, 18, 128>}, {transform_indices = @transform_1, window_bounds = array<i64: 1, 1, 2, 18, 128>}, {pipeline_mode = #tpu.pipeline_mode<synchronous>, transform_indices = @transform_2, window_bounds = array<i64: 9, 128, 128>}, {transform_indices = @transform_3, window_bounds = array<i64: 1, 1, 2, 128>}]} {
    %c0 = arith.constant 0 : index
    %c0_0 = arith.constant 0 : index
    %c0_1 = arith.constant 0 : index
    %c0_2 = arith.constant 0 : index
    %0 = vector.load %arg2[%c0, %c0_0, %c0_1, %c0_2] : memref<1x4x18x128xbf16, #tpu.memory_space<vmem>>, vector<1x4x18x128xbf16>
    %1 = vector.shape_cast %0 : vector<1x4x18x128xbf16> to vector<4x18x128xbf16>
    %c0_3 = arith.constant 0 : index
    %c0_4 = arith.constant 0 : index
    %c0_5 = arith.constant 0 : index
    %c0_6 = arith.constant 0 : index
    %c0_7 = arith.constant 0 : index
    %2 = vector.load %arg3[%c0_3, %c0_4, %c0_5, %c0_6, %c0_7] : memref<1x1x2x18x128xbf16, #tpu.memory_space<vmem>>, vector<1x1x2x18x128xbf16>
    %3 = vector.shape_cast %2 : vector<1x1x2x18x128xbf16> to vector<2x18x128xbf16>
    %4 = vector.extract_strided_slice %3 {offsets = [0, 0, 0], sizes = [1, 18, 128], strides = [1, 1, 1]} : vector<2x18x128xbf16> to vector<1x18x128xbf16>
    %5 = vector.extract_strided_slice %3 {offsets = [1, 0, 0], sizes = [1, 18, 128], strides = [1, 1, 1]} : vector<2x18x128xbf16> to vector<1x18x128xbf16>
    %6 = tpu.concatenate %4, %1, %5 in 0 : vector<1x18x128xbf16>, vector<4x18x128xbf16>, vector<1x18x128xbf16> -> vector<6x18x128xbf16>
    %7 = vector.extract_strided_slice %6 {offsets = [0, 0, 0], sizes = [4, 16, 128], strides = [1, 1, 1]} : vector<6x18x128xbf16> to vector<4x16x128xbf16>
    %8 = vector.shape_cast %7 : vector<4x16x128xbf16> to vector<64x128xbf16>
    %c0_8 = arith.constant 0 : index
    %c0_9 = arith.constant 0 : index
    %c0_10 = arith.constant 0 : index
    %9 = vector.load %arg4[%c0_8, %c0_9, %c0_10] : memref<9x128x128xbf16, #tpu.memory_space<vmem>>, vector<1x128x128xbf16>
    %10 = vector.shape_cast %9 : vector<1x128x128xbf16> to vector<128x128xbf16>
    %cst = arith.constant dense<0.000000e+00> : vector<64x128xf32>
    %11 = tpu.matmul %8, %10, %cst {dimension_numbers = #tpu.dot_dimension_numbers<[1], [0], [0], [1], [0, 0, 1, 1], [], []>} : vector<64x128xbf16>, vector<128x128xbf16>, vector<64x128xf32> -> vector<64x128xf32>
    %12 = vector.extract_strided_slice %6 {offsets = [0, 1, 0], sizes = [4, 16, 128], strides = [1, 1, 1]} : vector<6x18x128xbf16> to vector<4x16x128xbf16>
    %13 = vector.shape_cast %12 : vector<4x16x128xbf16> to vector<64x128xbf16>
    %c1 = arith.constant 1 : index
    %c0_11 = arith.constant 0 : index
    %c0_12 = arith.constant 0 : index
    %14 = vector.load %arg4[%c1, %c0_11, %c0_12] : memref<9x128x128xbf16, #tpu.memory_space<vmem>>, vector<1x128x128xbf16>
    %15 = vector.shape_cast %14 : vector<1x128x128xbf16> to vector<128x128xbf16>
    %cst_13 = arith.constant dense<0.000000e+00> : vector<64x128xf32>
    %16 = tpu.matmul %13, %15, %cst_13 {dimension_numbers = #tpu.dot_dimension_numbers<[1], [0], [0], [1], [0, 0, 1, 1], [], []>} : vector<64x128xbf16>, vector<128x128xbf16>, vector<64x128xf32> -> vector<64x128xf32>
    %17 = arith.addf %11, %16 : vector<64x128xf32>
    %18 = vector.extract_strided_slice %6 {offsets = [0, 2, 0], sizes = [4, 16, 128], strides = [1, 1, 1]} : vector<6x18x128xbf16> to vector<4x16x128xbf16>
    %19 = vector.shape_cast %18 : vector<4x16x128xbf16> to vector<64x128xbf16>
    %c2 = arith.constant 2 : index
    %c0_14 = arith.constant 0 : index
    %c0_15 = arith.constant 0 : index
    %20 = vector.load %arg4[%c2, %c0_14, %c0_15] : memref<9x128x128xbf16, #tpu.memory_space<vmem>>, vector<1x128x128xbf16>
    %21 = vector.shape_cast %20 : vector<1x128x128xbf16> to vector<128x128xbf16>
    %cst_16 = arith.constant dense<0.000000e+00> : vector<64x128xf32>
    %22 = tpu.matmul %19, %21, %cst_16 {dimension_numbers = #tpu.dot_dimension_numbers<[1], [0], [0], [1], [0, 0, 1, 1], [], []>} : vector<64x128xbf16>, vector<128x128xbf16>, vector<64x128xf32> -> vector<64x128xf32>
    %23 = arith.addf %17, %22 : vector<64x128xf32>
    %24 = vector.extract_strided_slice %6 {offsets = [1, 0, 0], sizes = [4, 16, 128], strides = [1, 1, 1]} : vector<6x18x128xbf16> to vector<4x16x128xbf16>
    %25 = vector.shape_cast %24 : vector<4x16x128xbf16> to vector<64x128xbf16>
    %c3 = arith.constant 3 : index
    %c0_17 = arith.constant 0 : index
    %c0_18 = arith.constant 0 : index
    %26 = vector.load %arg4[%c3, %c0_17, %c0_18] : memref<9x128x128xbf16, #tpu.memory_space<vmem>>, vector<1x128x128xbf16>
    %27 = vector.shape_cast %26 : vector<1x128x128xbf16> to vector<128x128xbf16>
    %cst_19 = arith.constant dense<0.000000e+00> : vector<64x128xf32>
    %28 = tpu.matmul %25, %27, %cst_19 {dimension_numbers = #tpu.dot_dimension_numbers<[1], [0], [0], [1], [0, 0, 1, 1], [], []>} : vector<64x128xbf16>, vector<128x128xbf16>, vector<64x128xf32> -> vector<64x128xf32>
    %29 = arith.addf %23, %28 : vector<64x128xf32>
    %30 = vector.extract_strided_slice %6 {offsets = [1, 1, 0], sizes = [4, 16, 128], strides = [1, 1, 1]} : vector<6x18x128xbf16> to vector<4x16x128xbf16>
    %31 = vector.shape_cast %30 : vector<4x16x128xbf16> to vector<64x128xbf16>
    %c4 = arith.constant 4 : index
    %c0_20 = arith.constant 0 : index
    %c0_21 = arith.constant 0 : index
    %32 = vector.load %arg4[%c4, %c0_20, %c0_21] : memref<9x128x128xbf16, #tpu.memory_space<vmem>>, vector<1x128x128xbf16>
    %33 = vector.shape_cast %32 : vector<1x128x128xbf16> to vector<128x128xbf16>
    %cst_22 = arith.constant dense<0.000000e+00> : vector<64x128xf32>
    %34 = tpu.matmul %31, %33, %cst_22 {dimension_numbers = #tpu.dot_dimension_numbers<[1], [0], [0], [1], [0, 0, 1, 1], [], []>} : vector<64x128xbf16>, vector<128x128xbf16>, vector<64x128xf32> -> vector<64x128xf32>
    %35 = arith.addf %29, %34 : vector<64x128xf32>
    %36 = vector.extract_strided_slice %6 {offsets = [1, 2, 0], sizes = [4, 16, 128], strides = [1, 1, 1]} : vector<6x18x128xbf16> to vector<4x16x128xbf16>
    %37 = vector.shape_cast %36 : vector<4x16x128xbf16> to vector<64x128xbf16>
    %c5 = arith.constant 5 : index
    %c0_23 = arith.constant 0 : index
    %c0_24 = arith.constant 0 : index
    %38 = vector.load %arg4[%c5, %c0_23, %c0_24] : memref<9x128x128xbf16, #tpu.memory_space<vmem>>, vector<1x128x128xbf16>
    %39 = vector.shape_cast %38 : vector<1x128x128xbf16> to vector<128x128xbf16>
    %cst_25 = arith.constant dense<0.000000e+00> : vector<64x128xf32>
    %40 = tpu.matmul %37, %39, %cst_25 {dimension_numbers = #tpu.dot_dimension_numbers<[1], [0], [0], [1], [0, 0, 1, 1], [], []>} : vector<64x128xbf16>, vector<128x128xbf16>, vector<64x128xf32> -> vector<64x128xf32>
    %41 = arith.addf %35, %40 : vector<64x128xf32>
    %42 = vector.extract_strided_slice %6 {offsets = [2, 0, 0], sizes = [4, 16, 128], strides = [1, 1, 1]} : vector<6x18x128xbf16> to vector<4x16x128xbf16>
    %43 = vector.shape_cast %42 : vector<4x16x128xbf16> to vector<64x128xbf16>
    %c6 = arith.constant 6 : index
    %c0_26 = arith.constant 0 : index
    %c0_27 = arith.constant 0 : index
    %44 = vector.load %arg4[%c6, %c0_26, %c0_27] : memref<9x128x128xbf16, #tpu.memory_space<vmem>>, vector<1x128x128xbf16>
    %45 = vector.shape_cast %44 : vector<1x128x128xbf16> to vector<128x128xbf16>
    %cst_28 = arith.constant dense<0.000000e+00> : vector<64x128xf32>
    %46 = tpu.matmul %43, %45, %cst_28 {dimension_numbers = #tpu.dot_dimension_numbers<[1], [0], [0], [1], [0, 0, 1, 1], [], []>} : vector<64x128xbf16>, vector<128x128xbf16>, vector<64x128xf32> -> vector<64x128xf32>
    %47 = arith.addf %41, %46 : vector<64x128xf32>
    %48 = vector.extract_strided_slice %6 {offsets = [2, 1, 0], sizes = [4, 16, 128], strides = [1, 1, 1]} : vector<6x18x128xbf16> to vector<4x16x128xbf16>
    %49 = vector.shape_cast %48 : vector<4x16x128xbf16> to vector<64x128xbf16>
    %c7 = arith.constant 7 : index
    %c0_29 = arith.constant 0 : index
    %c0_30 = arith.constant 0 : index
    %50 = vector.load %arg4[%c7, %c0_29, %c0_30] : memref<9x128x128xbf16, #tpu.memory_space<vmem>>, vector<1x128x128xbf16>
    %51 = vector.shape_cast %50 : vector<1x128x128xbf16> to vector<128x128xbf16>
    %cst_31 = arith.constant dense<0.000000e+00> : vector<64x128xf32>
    %52 = tpu.matmul %49, %51, %cst_31 {dimension_numbers = #tpu.dot_dimension_numbers<[1], [0], [0], [1], [0, 0, 1, 1], [], []>} : vector<64x128xbf16>, vector<128x128xbf16>, vector<64x128xf32> -> vector<64x128xf32>
    %53 = arith.addf %47, %52 : vector<64x128xf32>
    %54 = vector.extract_strided_slice %6 {offsets = [2, 2, 0], sizes = [4, 16, 128], strides = [1, 1, 1]} : vector<6x18x128xbf16> to vector<4x16x128xbf16>
    %55 = vector.shape_cast %54 : vector<4x16x128xbf16> to vector<64x128xbf16>
    %c8 = arith.constant 8 : index
    %c0_32 = arith.constant 0 : index
    %c0_33 = arith.constant 0 : index
    %56 = vector.load %arg4[%c8, %c0_32, %c0_33] : memref<9x128x128xbf16, #tpu.memory_space<vmem>>, vector<1x128x128xbf16>
    %57 = vector.shape_cast %56 : vector<1x128x128xbf16> to vector<128x128xbf16>
    %cst_34 = arith.constant dense<0.000000e+00> : vector<64x128xf32>
    %58 = tpu.matmul %55, %57, %cst_34 {dimension_numbers = #tpu.dot_dimension_numbers<[1], [0], [0], [1], [0, 0, 1, 1], [], []>} : vector<64x128xbf16>, vector<128x128xbf16>, vector<64x128xf32> -> vector<64x128xf32>
    %59 = arith.addf %53, %58 : vector<64x128xf32>
    %cst_35 = arith.constant dense<0.000000e+00> : vector<128xf32>
    %60 = vector.multi_reduction <add>, %59, %cst_35 [0] : vector<64x128xf32> to vector<128xf32>
    %61 = vector.shape_cast %60 : vector<128xf32> to vector<1x128xf32>
    %cst_36 = arith.constant 1.562500e-02 : f32
    %62 = vector.broadcast %cst_36 : f32 to vector<1x128xf32>
    %63 = arith.mulf %61, %62 : vector<1x128xf32>
    %64 = vector.broadcast %63 : vector<1x128xf32> to vector<64x128xf32>
    %65 = arith.subf %59, %64 : vector<64x128xf32>
    %66 = arith.mulf %65, %65 : vector<64x128xf32>
    %cst_37 = arith.constant dense<0.000000e+00> : vector<128xf32>
    %67 = vector.multi_reduction <add>, %66, %cst_37 [0] : vector<64x128xf32> to vector<128xf32>
    %68 = vector.shape_cast %67 : vector<128xf32> to vector<1x128xf32>
    %69 = tpu.concatenate %61, %68 in 0 : vector<1x128xf32>, vector<1x128xf32> -> vector<2x128xf32>
    %70 = vector.shape_cast %69 : vector<2x128xf32> to vector<1x1x2x128xf32>
    %c0_38 = arith.constant 0 : index
    %c0_39 = arith.constant 0 : index
    %c0_40 = arith.constant 0 : index
    %c0_41 = arith.constant 0 : index
    %71 = vector.load %arg5[%c0_38, %c0_39, %c0_40, %c0_41] : memref<1x1x2x128xf32, #tpu.memory_space<vmem>>, vector<1x1x2x128xf32>
    tpu.vector_store %arg5[%c0_38, %c0_39, %c0_40, %c0_41], %70 {strides = array<i32>} : memref<1x1x2x128xf32, #tpu.memory_space<vmem>>, vector<1x1x2x128xf32>,
    return
  }
  func.func @transform_0(%arg0: i32, %arg1: i32) -> (i32, i32, i32, i32) {
    %c0_i32 = arith.constant 0 : i32
    %c0_i32_0 = arith.constant 0 : i32
    %c0_i32_1 = arith.constant 0 : i32
    return %arg0, %arg1, %c0_i32, %c0_i32_0 : i32, i32, i32, i32
  }
  func.func @transform_1(%arg0: i32, %arg1: i32) -> (i32, i32, i32, i32, i32) {
    %c0_i32 = arith.constant 0 : i32
    %c0_i32_0 = arith.constant 0 : i32
    %c0_i32_1 = arith.constant 0 : i32
    %c0_i32_2 = arith.constant 0 : i32
    return %arg0, %arg1, %c0_i32, %c0_i32_0, %c0_i32_1 : i32, i32, i32, i32, i32
  }
  func.func @transform_2(%arg0: i32, %arg1: i32) -> (i32, i32, i32) {
    %c0_i32 = arith.constant 0 : i32
    %c0_i32_0 = arith.constant 0 : i32
    %c0_i32_1 = arith.constant 0 : i32
    %c0_i32_2 = arith.constant 0 : i32
    return %c0_i32, %c0_i32_0, %c0_i32_1 : i32, i32, i32
  }
  func.func @transform_3(%arg0: i32, %arg1: i32) -> (i32, i32, i32, i32) {
    %c0_i32 = arith.constant 0 : i32
    %c0_i32_0 = arith.constant 0 : i32
    %c0_i32_1 = arith.constant 0 : i32
    return %arg0, %arg1, %c0_i32, %c0_i32_0 : i32, i32, i32, i32
  }
}

module attributes {stable_mosaic.version = 11 : i64} {
  func.func @kernel(%arg0: i32, %arg1: i32, %arg2: memref<1x4x18x128xbf16, #tpu.memory_space<vmem>>, %arg3: memref<1x1x2x18x128xbf16, #tpu.memory_space<vmem>>, %arg4: memref<9x128x128xbf16, #tpu.memory_space<vmem>>, %arg5: memref<1x128xf32, #tpu.memory_space<vmem>>, %arg6: memref<1x128xf32, #tpu.memory_space<vmem>>, %arg7: memref<1x4x16x128xf32, #tpu.memory_space<vmem>>) attributes {dimension_semantics = [#tpu.dimension_semantics<parallel>, #tpu.dimension_semantics<parallel>], iteration_bounds = array<i64: 2, 4>, scalar_prefetch = 0 : i64, scratch_operands = 0 : i64, tpu.core_type = #tpu.core_type<tc>, window_params = [{transform_indices = @transform_0, window_bounds = array<i64: 1, 4, 18, 128>}, {transform_indices = @transform_1, window_bounds = array<i64: 1, 1, 2, 18, 128>}, {pipeline_mode = #tpu.pipeline_mode<synchronous>, transform_indices = @transform_2, window_bounds = array<i64: 9, 128, 128>}, {pipeline_mode = #tpu.pipeline_mode<synchronous>, transform_indices = @transform_3, window_bounds = array<i64: 1, 128>}, {pipeline_mode = #tpu.pipeline_mode<synchronous>, transform_indices = @transform_4, window_bounds = array<i64: 1, 128>}, {transform_indices = @transform_5, window_bounds = array<i64: 1, 4, 16, 128>}]} {
    %c0 = arith.constant 0 : index
    %c0_0 = arith.constant 0 : index
    %c0_1 = arith.constant 0 : index
    %c0_2 = arith.constant 0 : index
    %0 = vector.load %arg2[%c0, %c0_0, %c0_1, %c0_2] : memref<1x4x18x128xbf16, #tpu.memory_space<vmem>>, vector<1x4x18x128xbf16>
    %1 = vector.shape_cast %0 : vector<1x4x18x128xbf16> to vector<4x18x128xbf16>
    %c0_3 = arith.constant 0 : index
    %c0_4 = arith.constant 0 : index
    %c0_5 = arith.constant 0 : index
    %c0_6 = arith.constant 0 : index
    %c0_7 = arith.constant 0 : index
    %2 = vector.load %arg3[%c0_3, %c0_4, %c0_5, %c0_6, %c0_7] : memref<1x1x2x18x128xbf16, #tpu.memory_space<vmem>>, vector<1x1x2x18x128xbf16>
    %3 = vector.shape_cast %2 : vector<1x1x2x18x128xbf16> to vector<2x18x128xbf16>
    %4 = vector.extract_strided_slice %3 {offsets = [0, 0, 0], sizes = [1, 18, 128], strides = [1, 1, 1]} : vector<2x18x128xbf16> to vector<1x18x128xbf16>
    %5 = vector.extract_strided_slice %3 {offsets = [1, 0, 0], sizes = [1, 18, 128], strides = [1, 1, 1]} : vector<2x18x128xbf16> to vector<1x18x128xbf16>
    %6 = tpu.concatenate %4, %1, %5 in 0 : vector<1x18x128xbf16>, vector<4x18x128xbf16>, vector<1x18x128xbf16> -> vector<6x18x128xbf16>
    %7 = vector.extract_strided_slice %6 {offsets = [0, 0, 0], sizes = [4, 16, 128], strides = [1, 1, 1]} : vector<6x18x128xbf16> to vector<4x16x128xbf16>
    %8 = vector.shape_cast %7 : vector<4x16x128xbf16> to vector<64x128xbf16>
    %c0_8 = arith.constant 0 : index
    %c0_9 = arith.constant 0 : index
    %c0_10 = arith.constant 0 : index
    %9 = vector.load %arg4[%c0_8, %c0_9, %c0_10] : memref<9x128x128xbf16, #tpu.memory_space<vmem>>, vector<1x128x128xbf16>
    %10 = vector.shape_cast %9 : vector<1x128x128xbf16> to vector<128x128xbf16>
    %cst = arith.constant dense<0.000000e+00> : vector<64x128xf32>
    %11 = tpu.matmul %8, %10, %cst {dimension_numbers = #tpu.dot_dimension_numbers<[1], [0], [0], [1], [0, 0, 1, 1], [], []>} : vector<64x128xbf16>, vector<128x128xbf16>, vector<64x128xf32> -> vector<64x128xf32>
    %12 = vector.extract_strided_slice %6 {offsets = [0, 1, 0], sizes = [4, 16, 128], strides = [1, 1, 1]} : vector<6x18x128xbf16> to vector<4x16x128xbf16>
    %13 = vector.shape_cast %12 : vector<4x16x128xbf16> to vector<64x128xbf16>
    %c1 = arith.constant 1 : index
    %c0_11 = arith.constant 0 : index
    %c0_12 = arith.constant 0 : index
    %14 = vector.load %arg4[%c1, %c0_11, %c0_12] : memref<9x128x128xbf16, #tpu.memory_space<vmem>>, vector<1x128x128xbf16>
    %15 = vector.shape_cast %14 : vector<1x128x128xbf16> to vector<128x128xbf16>
    %cst_13 = arith.constant dense<0.000000e+00> : vector<64x128xf32>
    %16 = tpu.matmul %13, %15, %cst_13 {dimension_numbers = #tpu.dot_dimension_numbers<[1], [0], [0], [1], [0, 0, 1, 1], [], []>} : vector<64x128xbf16>, vector<128x128xbf16>, vector<64x128xf32> -> vector<64x128xf32>
    %17 = arith.addf %11, %16 : vector<64x128xf32>
    %18 = vector.extract_strided_slice %6 {offsets = [0, 2, 0], sizes = [4, 16, 128], strides = [1, 1, 1]} : vector<6x18x128xbf16> to vector<4x16x128xbf16>
    %19 = vector.shape_cast %18 : vector<4x16x128xbf16> to vector<64x128xbf16>
    %c2 = arith.constant 2 : index
    %c0_14 = arith.constant 0 : index
    %c0_15 = arith.constant 0 : index
    %20 = vector.load %arg4[%c2, %c0_14, %c0_15] : memref<9x128x128xbf16, #tpu.memory_space<vmem>>, vector<1x128x128xbf16>
    %21 = vector.shape_cast %20 : vector<1x128x128xbf16> to vector<128x128xbf16>
    %cst_16 = arith.constant dense<0.000000e+00> : vector<64x128xf32>
    %22 = tpu.matmul %19, %21, %cst_16 {dimension_numbers = #tpu.dot_dimension_numbers<[1], [0], [0], [1], [0, 0, 1, 1], [], []>} : vector<64x128xbf16>, vector<128x128xbf16>, vector<64x128xf32> -> vector<64x128xf32>
    %23 = arith.addf %17, %22 : vector<64x128xf32>
    %24 = vector.extract_strided_slice %6 {offsets = [1, 0, 0], sizes = [4, 16, 128], strides = [1, 1, 1]} : vector<6x18x128xbf16> to vector<4x16x128xbf16>
    %25 = vector.shape_cast %24 : vector<4x16x128xbf16> to vector<64x128xbf16>
    %c3 = arith.constant 3 : index
    %c0_17 = arith.constant 0 : index
    %c0_18 = arith.constant 0 : index
    %26 = vector.load %arg4[%c3, %c0_17, %c0_18] : memref<9x128x128xbf16, #tpu.memory_space<vmem>>, vector<1x128x128xbf16>
    %27 = vector.shape_cast %26 : vector<1x128x128xbf16> to vector<128x128xbf16>
    %cst_19 = arith.constant dense<0.000000e+00> : vector<64x128xf32>
    %28 = tpu.matmul %25, %27, %cst_19 {dimension_numbers = #tpu.dot_dimension_numbers<[1], [0], [0], [1], [0, 0, 1, 1], [], []>} : vector<64x128xbf16>, vector<128x128xbf16>, vector<64x128xf32> -> vector<64x128xf32>
    %29 = arith.addf %23, %28 : vector<64x128xf32>
    %30 = vector.extract_strided_slice %6 {offsets = [1, 1, 0], sizes = [4, 16, 128], strides = [1, 1, 1]} : vector<6x18x128xbf16> to vector<4x16x128xbf16>
    %31 = vector.shape_cast %30 : vector<4x16x128xbf16> to vector<64x128xbf16>
    %c4 = arith.constant 4 : index
    %c0_20 = arith.constant 0 : index
    %c0_21 = arith.constant 0 : index
    %32 = vector.load %arg4[%c4, %c0_20, %c0_21] : memref<9x128x128xbf16, #tpu.memory_space<vmem>>, vector<1x128x128xbf16>
    %33 = vector.shape_cast %32 : vector<1x128x128xbf16> to vector<128x128xbf16>
    %cst_22 = arith.constant dense<0.000000e+00> : vector<64x128xf32>
    %34 = tpu.matmul %31, %33, %cst_22 {dimension_numbers = #tpu.dot_dimension_numbers<[1], [0], [0], [1], [0, 0, 1, 1], [], []>} : vector<64x128xbf16>, vector<128x128xbf16>, vector<64x128xf32> -> vector<64x128xf32>
    %35 = arith.addf %29, %34 : vector<64x128xf32>
    %36 = vector.extract_strided_slice %6 {offsets = [1, 2, 0], sizes = [4, 16, 128], strides = [1, 1, 1]} : vector<6x18x128xbf16> to vector<4x16x128xbf16>
    %37 = vector.shape_cast %36 : vector<4x16x128xbf16> to vector<64x128xbf16>
    %c5 = arith.constant 5 : index
    %c0_23 = arith.constant 0 : index
    %c0_24 = arith.constant 0 : index
    %38 = vector.load %arg4[%c5, %c0_23, %c0_24] : memref<9x128x128xbf16, #tpu.memory_space<vmem>>, vector<1x128x128xbf16>
    %39 = vector.shape_cast %38 : vector<1x128x128xbf16> to vector<128x128xbf16>
    %cst_25 = arith.constant dense<0.000000e+00> : vector<64x128xf32>
    %40 = tpu.matmul %37, %39, %cst_25 {dimension_numbers = #tpu.dot_dimension_numbers<[1], [0], [0], [1], [0, 0, 1, 1], [], []>} : vector<64x128xbf16>, vector<128x128xbf16>, vector<64x128xf32> -> vector<64x128xf32>
    %41 = arith.addf %35, %40 : vector<64x128xf32>
    %42 = vector.extract_strided_slice %6 {offsets = [2, 0, 0], sizes = [4, 16, 128], strides = [1, 1, 1]} : vector<6x18x128xbf16> to vector<4x16x128xbf16>
    %43 = vector.shape_cast %42 : vector<4x16x128xbf16> to vector<64x128xbf16>
    %c6 = arith.constant 6 : index
    %c0_26 = arith.constant 0 : index
    %c0_27 = arith.constant 0 : index
    %44 = vector.load %arg4[%c6, %c0_26, %c0_27] : memref<9x128x128xbf16, #tpu.memory_space<vmem>>, vector<1x128x128xbf16>
    %45 = vector.shape_cast %44 : vector<1x128x128xbf16> to vector<128x128xbf16>
    %cst_28 = arith.constant dense<0.000000e+00> : vector<64x128xf32>
    %46 = tpu.matmul %43, %45, %cst_28 {dimension_numbers = #tpu.dot_dimension_numbers<[1], [0], [0], [1], [0, 0, 1, 1], [], []>} : vector<64x128xbf16>, vector<128x128xbf16>, vector<64x128xf32> -> vector<64x128xf32>
    %47 = arith.addf %41, %46 : vector<64x128xf32>
    %48 = vector.extract_strided_slice %6 {offsets = [2, 1, 0], sizes = [4, 16, 128], strides = [1, 1, 1]} : vector<6x18x128xbf16> to vector<4x16x128xbf16>
    %49 = vector.shape_cast %48 : vector<4x16x128xbf16> to vector<64x128xbf16>
    %c7 = arith.constant 7 : index
    %c0_29 = arith.constant 0 : index
    %c0_30 = arith.constant 0 : index
    %50 = vector.load %arg4[%c7, %c0_29, %c0_30] : memref<9x128x128xbf16, #tpu.memory_space<vmem>>, vector<1x128x128xbf16>
    %51 = vector.shape_cast %50 : vector<1x128x128xbf16> to vector<128x128xbf16>
    %cst_31 = arith.constant dense<0.000000e+00> : vector<64x128xf32>
    %52 = tpu.matmul %49, %51, %cst_31 {dimension_numbers = #tpu.dot_dimension_numbers<[1], [0], [0], [1], [0, 0, 1, 1], [], []>} : vector<64x128xbf16>, vector<128x128xbf16>, vector<64x128xf32> -> vector<64x128xf32>
    %53 = arith.addf %47, %52 : vector<64x128xf32>
    %54 = vector.extract_strided_slice %6 {offsets = [2, 2, 0], sizes = [4, 16, 128], strides = [1, 1, 1]} : vector<6x18x128xbf16> to vector<4x16x128xbf16>
    %55 = vector.shape_cast %54 : vector<4x16x128xbf16> to vector<64x128xbf16>
    %c8 = arith.constant 8 : index
    %c0_32 = arith.constant 0 : index
    %c0_33 = arith.constant 0 : index
    %56 = vector.load %arg4[%c8, %c0_32, %c0_33] : memref<9x128x128xbf16, #tpu.memory_space<vmem>>, vector<1x128x128xbf16>
    %57 = vector.shape_cast %56 : vector<1x128x128xbf16> to vector<128x128xbf16>
    %cst_34 = arith.constant dense<0.000000e+00> : vector<64x128xf32>
    %58 = tpu.matmul %55, %57, %cst_34 {dimension_numbers = #tpu.dot_dimension_numbers<[1], [0], [0], [1], [0, 0, 1, 1], [], []>} : vector<64x128xbf16>, vector<128x128xbf16>, vector<64x128xf32> -> vector<64x128xf32>
    %59 = arith.addf %53, %58 : vector<64x128xf32>
    %c0_35 = arith.constant 0 : index
    %c0_36 = arith.constant 0 : index
    %60 = vector.load %arg5[%c0_35, %c0_36] : memref<1x128xf32, #tpu.memory_space<vmem>>, vector<1x128xf32>
    %61 = vector.broadcast %60 : vector<1x128xf32> to vector<64x128xf32>
    %62 = arith.mulf %59, %61 : vector<64x128xf32>
    %c0_37 = arith.constant 0 : index
    %c0_38 = arith.constant 0 : index
    %63 = vector.load %arg6[%c0_37, %c0_38] : memref<1x128xf32, #tpu.memory_space<vmem>>, vector<1x128xf32>
    %64 = vector.broadcast %63 : vector<1x128xf32> to vector<64x128xf32>
    %65 = arith.addf %62, %64 : vector<64x128xf32>
    %cst_39 = arith.constant 0.000000e+00 : f32
    %66 = vector.broadcast %cst_39 : f32 to vector<64x128xf32>
    %67 = arith.cmpf ogt, %65, %66 : vector<64x128xf32>
    %cst_40 = arith.constant 2.000000e-01 : f32
    %68 = vector.broadcast %cst_40 : f32 to vector<64x128xf32>
    %69 = arith.mulf %68, %65 : vector<64x128xf32>
    %70 = arith.select %67, %65, %69 : vector<64x128xi1>, vector<64x128xf32>
    %71 = vector.extract_strided_slice %1 {offsets = [0, 1, 0], sizes = [4, 16, 128], strides = [1, 1, 1]} : vector<4x18x128xbf16> to vector<4x16x128xbf16>
    %72 = vector.shape_cast %71 : vector<4x16x128xbf16> to vector<64x128xbf16>
    %73 = arith.extf %72 : vector<64x128xbf16> to vector<64x128xf32>
    %74 = arith.addf %70, %73 : vector<64x128xf32>
    %75 = vector.shape_cast %74 : vector<64x128xf32> to vector<1x4x16x128xf32>
    %c0_41 = arith.constant 0 : index
    %c0_42 = arith.constant 0 : index
    %c0_43 = arith.constant 0 : index
    %c0_44 = arith.constant 0 : index
    %76 = vector.load %arg7[%c0_41, %c0_42, %c0_43, %c0_44] : memref<1x4x16x128xf32, #tpu.memory_space<vmem>>, vector<1x4x16x128xf32>
    tpu.vector_store %arg7[%c0_41, %c0_42, %c0_43, %c0_44], %75 {strides = array<i32>} : memref<1x4x16x128xf32, #tpu.memory_space<vmem>>, vector<1x4x16x128xf32>,
    return
  }
  func.func @transform_0(%arg0: i32, %arg1: i32) -> (i32, i32, i32, i32) {
    %c0_i32 = arith.constant 0 : i32
    %c0_i32_0 = arith.constant 0 : i32
    %c0_i32_1 = arith.constant 0 : i32
    return %arg0, %arg1, %c0_i32, %c0_i32_0 : i32, i32, i32, i32
  }
  func.func @transform_1(%arg0: i32, %arg1: i32) -> (i32, i32, i32, i32, i32) {
    %c0_i32 = arith.constant 0 : i32
    %c0_i32_0 = arith.constant 0 : i32
    %c0_i32_1 = arith.constant 0 : i32
    %c0_i32_2 = arith.constant 0 : i32
    return %arg0, %arg1, %c0_i32, %c0_i32_0, %c0_i32_1 : i32, i32, i32, i32, i32
  }
  func.func @transform_2(%arg0: i32, %arg1: i32) -> (i32, i32, i32) {
    %c0_i32 = arith.constant 0 : i32
    %c0_i32_0 = arith.constant 0 : i32
    %c0_i32_1 = arith.constant 0 : i32
    %c0_i32_2 = arith.constant 0 : i32
    return %c0_i32, %c0_i32_0, %c0_i32_1 : i32, i32, i32
  }
  func.func @transform_3(%arg0: i32, %arg1: i32) -> (i32, i32) {
    %c0_i32 = arith.constant 0 : i32
    %c0_i32_0 = arith.constant 0 : i32
    %c0_i32_1 = arith.constant 0 : i32
    return %c0_i32, %c0_i32_0 : i32, i32
  }
  func.func @transform_4(%arg0: i32, %arg1: i32) -> (i32, i32) {
    %c0_i32 = arith.constant 0 : i32
    %c0_i32_0 = arith.constant 0 : i32
    %c0_i32_1 = arith.constant 0 : i32
    return %c0_i32, %c0_i32_0 : i32, i32
  }
  func.func @transform_5(%arg0: i32, %arg1: i32) -> (i32, i32, i32, i32) {
    %c0_i32 = arith.constant 0 : i32
    %c0_i32_0 = arith.constant 0 : i32
    %c0_i32_1 = arith.constant 0 : i32
    return %arg0, %arg1, %c0_i32, %c0_i32_0 : i32, i32, i32, i32
  }
}

</mosaic_0001>

<bundles_post_ra>
// kernel: residual_block.2
= control target key start
LH: loop header
LB: loop body
LE: loop exit
PB: predicated region body
PF: predicated region fallthrough
CT: control target
= control target key end

     0   :  { %s2257_s12 = smov 0   ;;  %s2259_s13 = smov 0   ;;  %s2748_s0 = inlined_call_operand.vmem [shape: bf16[2,16,18,128], index: 0, kind: input, shape index: {}]   ;;  %s2749_s1 = inlined_call_operand.vmem [shape: bf16[2,4,2,18,128], index: 1, kind: input, shape index: {}]   ;;  %s2750_s2 = inlined_call_operand.vmem [shape: bf16[9,128,128], index: 2, kind: input, shape index: {}]   ;;  %s2751_s3 = inlined_call_operand.vmem [shape: f32[2,4,2,128], index: 3, kind: output, shape index: {}]  }
   0x1   :  { %s2261_s14 = smov 0   ;;  %s2263_s15 = smov 0  }
   0x2   :  { %s2265_s16 = smov 0  }
   0x3 LB: > { %s22_s17 = sadd.s32 1, %s2227_s14  ;;  %s25_s18 = sadd.s32 1, %s2231_s15  ;;  %s2235_s16 = sphi %s2265_s16, %s13_s16   ;;  %s2231_s15 = sphi %s2263_s15, %s2759_s15   ;;  %s2227_s14 = sphi %s2261_s14, %s2758_s14   ;;  %s2223_s13 = sphi %s2259_s13, %s2757_s13   ;;  %s2219_s12 = sphi %s2257_s12, %s2756_s12  }
   0x4   : > { %p23_p0 = scmp.ge.s32.totalorder %s22_s17, 4  ;;  %p1605_p1 = scmp.ge.s32.totalorder %s2235_s16, 1 }
   0x5   : > { %p175_p2 = scmp.lt.s32.totalorder %s2235_s16, 9 }
   0x6   : > { %s2761_s17 = smov (%p23_p0, %s22_s17), 0  ;;  %s2763_s18 = smov (!%p23_p0, %s25_s18), %s2231_s15 }
   0x7   : > { %p176_p3 = pnand %p1605_p1, %p175_p2  ;;  %p27_p4 = scmp.ge.s32.totalorder %s2763_s18, 2 }
   0x8   : > { %s1606_s21 = sshll.u32 (!%p176_p3), %s2219_s12, 2  ;;  %p217_p5 = scmp.lt.s32.totalorder (!%p176_p3), %s2223_s13, 1 }
   0x9   : > { %s2765_s18 = smov (%p27_p4, %s2763_s18), 0  ;;  %179 = sbr.rel (%p176_p3) target bundleno = 380 (0x17c), region = 32 }
   0xa   : > { %p219_p6 = scmp.lt.s32.totalorder (!%p176_p3), %s1606_s21, 15  ;;  %p229_p7 = scmp.lt.s32.totalorder (!%p176_p3), %s2219_s12, 3 }
   0xe   : > { %v2080_v0 = vld [vmem:[%s2750_s2 + $0x78] sm:$0xff]  ;;  %v2079_v2 = vld [vmem:[%s2750_s2 + $0x70] sm:$0xff]  ;;  %s2767_s13 = smov (!%p217_p5, %s2223_s13), 1  ;;  %s2769_s21 = smov (!%p219_p6, %s1606_s21), 15  ;;  %v2078_v6 = vld [vmem:[%s2750_s2 + $0x68] sm:$0xff]  ;;  %vm592_vm2 = vcmask 1042432  }
   0xf   : > { %v2088_v1 = vld [vmem:[%s2750_s2 + $0xb8] sm:$0xff]  ;;  %2137 = vmatpush.bf16.msra.mxu1 %v2080_v0  ;;  %458 = vmatpush.bf16.msra.mxu0 %v2080_v0  ;;  %v2087_v3 = vld [vmem:[%s2750_s2 + $0xb0] sm:$0xff]  ;;  %s2154_s30 = smul.u32 48, %s2767_s13  ;;  %s2771_s12 = smov (!%p229_p7, %s2219_s12), 3  ;;  %v2086_v7 = vld [vmem:[%s2750_s2 + $0xa8] sm:$0xff]  ;;  %vm593_vm3 = vcmask 1046532  }
  0x10   : > { %704 = vmatpush.bf16.msra.mxu2 %v2088_v1  ;;  %v2096_v4 = vld [vmem:[%s2750_s2 + $0xf8] sm:$0xff]  ;;  %v2095_v5 = vld [vmem:[%s2750_s2 + $0xf0] sm:$0xff]  ;;  %s2153_s6 = smul.u32 3, %s2769_s21  ;;  %v2077_v8 = vld [vmem:[%s2750_s2 + $0x60] sm:$0xff]  ;;  %vm278_vm0 = vsmask.f32 3328 }
  0x11   : > { %812 = vmatpush.bf16.msra.mxu3 %v2096_v4  ;;  %s2156_s19 = smul.u32 24, %s2767_s13  ;;  %v2094_v9 = vld [vmem:[%s2750_s2 + $0xe8] sm:$0xff]  ;;  %v2085_v13 = vld [vmem:[%s2750_s2 + $0xa0] sm:$0xff]  ;;  %v2076_v18 = vld [vmem:[%s2750_s2 + $0x58] sm:$0xff]  ;;  %vm279_vm1 = vsmask.f32 7440 }
  0x12   : > { %s223_s11 = sadd.s32 %s2154_s30, %s2153_s6  ;;  %s2155_s22 = smul.u32 6, %s2771_s12  ;;  %v2093_v20 = vld [vmem:[%s2750_s2 + $0xe0] sm:$0xff]  ;;  %v2084_v30 = vld [vmem:[%s2750_s2 + $0x98] sm:$0xff]  ;;  %vm2373_vm4 = vmor %vm278_vm0, %vm279_vm1  ;;  %vm1488_vm6 = vcmask 1040384  }
  0x13   : > { %2138 = vmatpush.bf16.msra.mxu1 %v2079_v2  ;;  %459 = vmatpush.bf16.msra.mxu0 %v2079_v2  ;;  %s1607_s20 = sshll.u32 %s223_s11, 2  ;;  %v2092_v38 = vld [vmem:[%s2750_s2 + $0xd8] sm:$0xff]  ;;  %v2075_v46 = vld [vmem:[%s2750_s2 + $0x50] sm:$0xff]  ;;  %vm2385_vm5 = vmor %vm592_vm2, %vm593_vm3 }
  0x14   : > { %705 = vmatpush.bf16.msra.mxu2 %v2087_v3  ;;  %s2332_s28 = scalar_lea.vmem %s2748_s0, %s1607_s20  ;;  %s233_s29 = sadd.s32 %s2156_s19, %s2155_s22  ;;  %v2083_v50 = vld [vmem:[%s2750_s2 + $0x90] sm:$0xff]  ;;  %v2074_v63 = vld [vmem:[%s2750_s2 + $0x48] sm:$0xff] }
  0x15   : > { %813 = vmatpush.bf16.msra.mxu3 %v2095_v5  ;;  %v2335_v10 = vld [vmem:[%s2332_s28 + $0xc] sm:$0xf]  ;;  %v2338_v11 = vld [vmem:[%s2332_s28 + $0x10] sm:$0xf]  ;;  %v2341_v12 = vld [vmem:[%s2332_s28 + $0x14] sm:$0x1] }
  0x16   : > { %v330_v14 = vshrl.u32 %v2335_v10, 16  ;;  %v333_v15 = vshll.u32 %v2335_v10, 16  ;;  %v339_v16 = vshll.u32 %v2338_v11, 16  ;;  %v343_v17 = vshrl.u32 %v2338_v11, 16  ;;  %s1608_s5 = sshll.u32 %s233_s29, 2  ;;  %v2091_v62 = vld [vmem:[%s2750_s2 + $0xd0] sm:$0xff] }
  0x17   : > { %2139 = vmatpush.bf16.msra.mxu1 %v2078_v6  ;;  %460 = vmatpush.bf16.msra.mxu0 %v2078_v6  ;;  %v349_v19 = vshll.u32 %v2341_v12, 16  ;;  %s2360_s19 = scalar_lea.vmem %s2749_s1, %s1608_s5  ;;  %v2378_v45 = vld [vmem:[%s2332_s28 + $0x18] sm:$0xf]  ;;  %v2393_v53 = vld [vmem:[%s2332_s28 + $0x1c] sm:$0xf]  ;;  %v2082_v4 = vld [vmem:[%s2750_s2 + $0x88] sm:$0xff] }
  0x18   : > { %706 = vmatpush.bf16.msra.mxu2 %v2086_v7  ;;  %v332_v21 = vrot.slane %v330_v14, 4  ;;  %v335_v22 = vrot.slane %v333_v15, 5  ;;  %v341_v23 = vrot.slane %v339_v16, 5  ;;  %v345_v24 = vrot.slane %v343_v17, 4  ;;  %v256_v25 = vld [vmem:[%s2360_s19] sm:$0xf] }
  0x19   : > { %814 = vmatpush.bf16.msra.mxu3 %v2094_v9  ;;  %v351_v26 = vrot.slane %v349_v19, 5  ;;  %v257_v27 = vld [vmem:[%s2360_s19 + $0x4] sm:$0xf]  ;;  %v258_v28 = vld [vmem:[%s2360_s19 + $0x8] sm:$0x1]  ;;  %v282_v29 = vshrl.u32 %v256_v25, 16 }
  0x1a   : > { %v336_v31 = vor.u32 %v335_v22, %v332_v21  ;;  %v346_v32 = vor.u32 %v345_v24, %v341_v23  ;;  %v285_v33 = vshll.u32 %v256_v25, 16  ;;  %v291_v34 = vshll.u32 %v257_v27, 16  ;;  %v2424_v16 = vld [vmem:[%s2332_s28 + $0x4] sm:$0xf]  ;;  %v2430_v21 = vld [vmem:[%s2332_s28 + $0x20] sm:$0x1] }
  0x1b   : > { %2140 = vmatpush.bf16.msra.mxu1 %v2077_v8  ;;  %461 = vmatpush.bf16.msra.mxu0 %v2077_v8  ;;  %v284_v35 = vrot.slane %v282_v29, 4  ;;  %v295_v36 = vshrl.u32 %v257_v27, 16  ;;  %v301_v37 = vshll.u32 %v258_v28, 16  ;;  %v1707_v39 = vrot.slane %v256_v25, 9  ;;  %v2419_v8 = vld [vmem:[%s2332_s28] sm:$0xf] }
  0x1c   : > { %707 = vmatpush.bf16.msra.mxu2 %v2085_v13  ;;  %v337_v41 = vrot.slane %v336_v31, 4  ;;  %v347_v42 = vrot.slane %v346_v32, 4  ;;  %v287_v43 = vrot.slane %v285_v33, 5  ;;  %v293_v44 = vrot.slane %v291_v34, 5  ;;  %v2081_v29 = vld [vmem:[%s2750_s2 + $0x80] sm:$0xff]  ;;  %v2104_v34 = vld [vmem:[%s2750_s2 + $0x138] sm:$0xff] }
  0x1d   : > { %815 = vmatpush.bf16.msra.mxu3 %v2093_v20  ;;  %v297_v47 = vrot.slane %v295_v36, 4  ;;  %v597_v49 = vrot.slane %v257_v27, 5  ;;  %v600_v52 = vrot.slane %v258_v28, 5  ;;  %v303_v56 = vrot.slane %v301_v37, 5  ;;  %v2090_v20 = vld [vmem:[%s2750_s2 + $0xc8] sm:$0xff]  ;;  %v2072_v28 = vld [vmem:[%s2750_s2 + $0x38] sm:$0xff] }
  0x1e   : > { %v288_v51 = vor.u32 %v287_v43, %v284_v35  ;;  %v342_v54 = vsel %vm2373_vm4, %v337_v41, %v341_v23  ;;  %v354_v57 = vshrl.u32 %v2378_v45, 16  ;;  %v352_v58 = vsel %vm2373_vm4, %v347_v42, %v351_v26  ;;  %v2073_v23 = vld [vmem:[%s2750_s2 + $0x40] sm:$0xff]  ;;  %v2120_v36 = vld [vmem:[%s2750_s2 + $0x1b8] sm:$0xff] }
  0x1f   : > { %2141 = vmatpush.bf16.msra.mxu1 %v2076_v18  ;;  %462 = vmatpush.bf16.msra.mxu0 %v2076_v18  ;;  %v298_v55 = vor.u32 %v297_v47, %v293_v44  ;;  %v598_v60 = vsel %vm2385_vm5, %v1707_v39, %v597_v49  ;;  %v599_v61 = vrot.slane %v597_v49, 4  ;;  %v357_v1 = vshll.u32 %v2378_v45, 16  ;;  %v2089_v47 = vld [vmem:[%s2750_s2 + $0xc0] sm:$0xff] }
  0x20   : > { %708 = vmatpush.bf16.msra.mxu2 %v2084_v30  ;;  %v289_v59 = vrot.slane %v288_v51, 4  ;;  %v363_v2 = vshll.u32 %v2393_v53, 16  ;;  %v398_v3 = vunpack.c.l.b16 %v342_v54  ;;  %v367_v7 = vshrl.u32 %v2393_v53, 16  ;;  %v2446_v30 = vld [vmem:[%s2332_s28 + $0x8] sm:$0x1]  ;;  %v2071_v51 = vld [vmem:[%s2750_s2 + $0x30] sm:$0xff] }
  0x21   : > { %816 = vmatpush.bf16.msra.mxu3 %v2092_v38  ;;  %v299_v0 = vrot.slane %v298_v55, 4  ;;  %v601_v6 = vsel %vm2385_vm5, %v599_v61, %v600_v52  ;;  %v399_v9 = vunpack.c.l.b16 %v352_v58  ;;  %v640_v14 = vunpack.c.l.b16 %v598_v60  ;;  %v2128_v55 = vld [vmem:[%s2750_s2 + $0x1f8] sm:$0xff]  ;;  %v2479_v60 = vld [vmem:[%s2332_s28] sm:$0xff] }
  0x22   : > { %v294_v5 = vsel %vm2373_vm4, %v289_v59, %v293_v44  ;;  %v356_v15 = vrot.slane %v354_v57, 4  ;;  %v641_v19 = vunpack.c.l.b16 %v601_v6  ;;  %v359_v22 = vrot.slane %v357_v1, 5  ;;  %v2119_v57 = vld [vmem:[%s2750_s2 + $0x1b0] sm:$0xff]  ;;  %v2070_v1 = vld [vmem:[%s2750_s2 + $0x28] sm:$0xff] }
  0x23   : > { %2142 = vmatpush.bf16.msra.mxu1 %v2075_v46  ;;  %463 = vmatpush.bf16.msra.mxu0 %v2075_v46  ;;  %v304_v13 = vsel %vm2373_vm4, %v299_v0, %v303_v56  ;;  %v394_v17 = vunpack.c.l.b16 %v294_v5  ;;  %v2435_v24 = vrot.slane %v363_v2, 5  ;;  %v369_v25 = vrot.slane %v367_v7, 4  ;;  %v2103_v56 = vld [vmem:[%s2750_s2 + $0x130] sm:$0xff]  ;;  %v2102_v6 = vld [vmem:[%s2750_s2 + $0x128] sm:$0xff] }
  0x24   : > { %709 = vmatpush.bf16.msra.mxu2 %v2083_v50  ;;  %v395_v18 = vunpack.c.l.b16 %v304_v13  ;;  %v306_v26 = vshrl.u32 %v2419_v8, 16  ;;  %v309_v27 = vshll.u32 %v2419_v8, 16  ;;  %v315_v31 = vshll.u32 %v2424_v16, 16  ;;  %v2127_v5 = vld [vmem:[%s2750_s2 + $0x1f0] sm:$0xff]  ;;  %v2118_v7 = vld [vmem:[%s2750_s2 + $0x1a8] sm:$0xff] }
  0x25   : > { %817 = vmatpush.bf16.msra.mxu3 %v2091_v62  ;;  %v319_v32 = vshrl.u32 %v2424_v16, 16  ;;  %v2450_v33 = vpack.c.b16 %v399_v9, %v398_v3  ;;  %v373_v35 = vshll.u32 %v2430_v21, 16  ;;  %v360_v41 = vor.u32 %v359_v22, %v356_v15  ;;  %v2069_v15 = vld [vmem:[%s2750_s2 + $0x20] sm:$0xff] }
  0x26   : > { %v308_v37 = vrot.slane %v306_v26, 4  ;;  %v311_v38 = vrot.slane %v309_v27, 5  ;;  %v402_v39 = vpack.c.b16 %v395_v18, %v394_v17  ;;  %v317_v42 = vrot.slane %v315_v31, 5  ;;  %v2126_v18 = vld [vmem:[%s2750_s2 + $0x1e8] sm:$0xff] }
  0x27   : > { %2143 = vmatpush.bf16.msra.mxu1 %v2074_v63  ;;  %464 = vmatpush.bf16.msra.mxu0 %v2074_v63  ;;  %v321_v43 = vrot.slane %v319_v32, 4  ;;  %v648_v44 = vpack.c.b16 %v641_v19, %v640_v14  ;;  %v370_v46 = vor.u32 %v369_v25, %v2435_v24  ;;  %v325_v50 = vshll.u32 %v2446_v30, 16  ;;  %v2101_v19 = vld [vmem:[%s2750_s2 + $0x120] sm:$0xff] }
  0x28   : > { %710 = vmatpush.bf16.msra.mxu2 %v2082_v4  ;;  %v312_v49 = vor.u32 %v311_v38, %v308_v37  ;;  %v604_v54 = vrot.slane %v2424_v16, 5  ;;  %v361_v58 = vrot.slane %v360_v41, 4  ;;  %v375_v59 = vrot.slane %v373_v35, 5  ;;  %v2540_v37 = vld [vmem:[%s2332_s28 + $0xc] sm:$0xff]  ;;  %v2116_v38 = vld [vmem:[%s2750_s2 + $0x198] sm:$0xff] }
  0x29   : > { %818 = vmatpush.bf16.msra.mxu3 %v2090_v20  ;;  %v322_v52 = vor.u32 %v321_v43, %v317_v42  ;;  %v371_v61 = vrot.slane %v370_v46, 4  ;;  %v327_v0 = vrot.slane %v325_v50, 5  ;;  %v1708_v2 = vrot.slane %v2419_v8, 9  ;;  %v2117_v20 = vld [vmem:[%s2750_s2 + $0x1a0] sm:$0xff]  ;;  %v2098_v46 = vld [vmem:[%s2750_s2 + $0x108] sm:$0xff]  ;;  %v2112_v50 = vld [vmem:[%s2750_s2 + $0x178] sm:$0xff] }
  0x2a   : > { %v313_v62 = vrot.slane %v312_v49, 4  ;;  %v606_v3 = vrot.slane %v604_v54, 4  ;;  %v607_v4 = vrot.slane %v2446_v30, 5  ;;  %v366_v8 = vsel %vm2373_vm4, %v361_v58, %v2435_v24 }
  0x2b   : > { %2144 = vmatpush.bf16.msra.mxu1 %v2073_v23  ;;  %465 = vmatpush.bf16.msra.mxu0 %v2073_v23  ;;  %v323_v63 = vrot.slane %v322_v52, 4  ;;  %v376_v9 = vsel %vm2373_vm4, %v371_v61, %v375_v59  ;;  %v605_v16 = vsel %vm2385_vm5, %v1708_v2, %v604_v54  ;;  %v400_v22 = vunpack.c.l.b16 %v366_v8  ;;  %v2136_v52 = vld [vmem:[%s2750_s2 + $0x238] sm:$0xff]  ;;  %v2135_v59 = vld [vmem:[%s2750_s2 + $0x230] sm:$0xff] }
  0x2c   : > { %711 = vmatpush.bf16.msra.mxu2 %v2081_v29  ;;  %v318_v13 = vsel %vm2373_vm4, %v313_v62, %v317_v42  ;;  %v608_v17 = vsel %vm2385_vm5, %v606_v3, %v607_v4  ;;  %v401_v23 = vunpack.c.l.b16 %v376_v9  ;;  %v642_v26 = vunpack.c.l.b16 %v605_v16  ;;  %v2100_v29 = vld [vmem:[%s2750_s2 + $0x118] sm:$0xff]  ;;  %v2110_v62 = vld [vmem:[%s2750_s2 + $0x168] sm:$0xff] }
  0x2d   : > { %819 = vmatpush.bf16.msra.mxu3 %v2089_v47  ;;  %v328_v14 = vsel %vm2373_vm4, %v323_v63, %v327_v0  ;;  %v396_v24 = vunpack.c.l.b16 %v318_v13  ;;  %v643_v27 = vunpack.c.l.b16 %v608_v17  ;;  %v611_v35 = vrot.slane %v2338_v11, 5  ;;  %v2125_v11 = vld [vmem:[%s2750_s2 + $0x1e0] sm:$0xff]  ;;  %v2124_v47 = vld [vmem:[%s2750_s2 + $0x1d8] sm:$0xff]  ;;  %v2114_v63 = vld [vmem:[%s2750_s2 + $0x188] sm:$0xff] }
  0x2e   : > { %476 = vmatmul.bf16.vlgmr.msra.gmra.mxu1 %v2450_v33  ;;  %466 = vmatmul.bf16.vlgmr.msra.gmra.mxu0 %v402_v39  ;;  %v397_v25 = vunpack.c.l.b16 %v328_v14  ;;  %v2527_v30 = vpack.c.b16 %v401_v23, %v400_v22  ;;  %v2066_v39 = vld [vmem:[%s2750_s2 + $0x8] sm:$0xff]  ;;  %v1709_v41 = vrot.slane %v2335_v10, 9  ;;  %v614_v43 = vrot.slane %v2341_v12, 5  ;;  %v2065_v10 = vld [vmem:[%s2750_s2] sm:$0xff]  ;;  %v2597_v0 = vld [vmem:[%s2332_s28 + $0x18] sm:$0xff] }
  0x2f   : > { %559 = vmatpush.bf16.msrb.mxu1 %v2072_v28  ;;  %942 = vmatpush.bf16.msrb.mxu0 %v2104_v34  ;;  %v2068_v28 = vld [vmem:[%s2750_s2 + $0x18] sm:$0xff]  ;;  %v2529_v32 = vpack.c.b16 %v643_v27, %v642_v26  ;;  %v2067_v34 = vld [vmem:[%s2750_s2 + $0x10] sm:$0xff]  ;;  %v613_v42 = vrot.slane %v611_v35, 4  ;;  %v618_v61 = vrot.slane %v2393_v53, 5  ;;  %v2134_v53 = vld [vmem:[%s2750_s2 + $0x228] sm:$0xff]  ;;  %v1710_v2 = vrot.slane %v2378_v45, 9 }
  0x30   : > { %1164 = vmatpush.bf16.msrb.mxu2 %v2120_v36  ;;  %820 = vmatmul.bf16.vlgmr.msra.gmra.mxu3 %v2479_v60  ;;  %v403_v31 = vpack.c.b16 %v397_v25, %v396_v24  ;;  %v2099_v36 = vld [vmem:[%s2750_s2 + $0x110] sm:$0xff]  ;;  %v612_v12 = vsel %vm2385_vm5, %v1709_v41, %v611_v35  ;;  %v621_v4 = vrot.slane %v2430_v21, 5  ;;  %v2133_v45 = vld [vmem:[%s2750_s2 + $0x220] sm:$0xff]  ;;  %v2108_v9 = vld [vmem:[%s2750_s2 + $0x158] sm:$0xff] }
  0x31   : > { %712 = vmatmul.bf16.vlgmr.msra.gmra.mxu2 %v648_v44  ;;  %1294 = vmatpush.bf16.msrb.mxu3 %v2128_v55  ;;  %v2115_v44 = vld [vmem:[%s2750_s2 + $0x190] sm:$0xff]  ;;  %v615_v49 = vsel %vm2385_vm5, %v613_v42, %v614_v43  ;;  %v644_v54 = vunpack.c.l.b16 %v612_v12  ;;  %v620_v3 = vrot.slane %v618_v61, 4  ;;  %v619_v21 = vsel %vm2385_vm5, %v1710_v2, %v618_v61  ;;  %v2634_v17 = vld [vmem:[%s2332_s28 + $0x24] sm:$0xff] }
  0x32   : > { %v645_v55 = vunpack.c.l.b16 %v615_v49  ;;  %v646_v13 = vunpack.c.l.b16 %v619_v21  ;;  %v2649_v22 = vld [vmem:[%s2332_s28 + $0x24] sm:$0xf]  ;;  %v2131_v23 = vld [vmem:[%s2750_s2 + $0x210] sm:$0xff] }
  0x33   : > { %560 = vmatpush.bf16.msrb.mxu1 %v2071_v51  ;;  %943 = vmatpush.bf16.msrb.mxu0 %v2103_v56  ;;  %v2097_v51 = vld [vmem:[%s2750_s2 + $0x100] sm:$0xff]  ;;  %v2111_v56 = vld [vmem:[%s2750_s2 + $0x170] sm:$0xff]  ;;  %v622_v8 = vsel %vm2385_vm5, %v620_v3, %v621_v4  ;;  %v850_v25 = vshrl.u32 %v2649_v22, 16  ;;  %v853_v26 = vshll.u32 %v2649_v22, 16 }
  0x34   : > { %1165 = vmatpush.bf16.msrb.mxu2 %v2119_v57  ;;  %v2063_v57 = vld [vmem:[%s2360_s19] sm:$0xff]  ;;  %v2584_v58 = vpack.c.b16 %v645_v55, %v644_v54  ;;  %v647_v14 = vunpack.c.l.b16 %v622_v8  ;;  %v1859_v8 = vrot.slane %v2649_v22, 9 }
  0x35   : > { %1295 = vmatpush.bf16.msrb.mxu3 %v2127_v5  ;;  %v2113_v5 = vld [vmem:[%s2750_s2 + $0x180] sm:$0xff] }
  0x36   : > { %v2631_v16 = vpack.c.b16 %v647_v14, %v646_v13  ;;  %v2105_v24 = vld [vmem:[%s2750_s2 + $0x140] sm:$0xff] }
  0x37   : > { %561 = vmatpush.bf16.msrb.mxu1 %v2070_v1  ;;  %944 = vmatpush.bf16.msrb.mxu0 %v2102_v6  ;;  %v2123_v1 = vld [vmem:[%s2750_s2 + $0x1d0] sm:$0xff]  ;;  %v2109_v6 = vld [vmem:[%s2750_s2 + $0x160] sm:$0xff] }
  0x38   : > { %1166 = vmatpush.bf16.msrb.mxu2 %v2118_v7  ;;  %v2122_v7 = vld [vmem:[%s2750_s2 + $0x1c8] sm:$0xff]  ;;  %v2129_v42 = vld [vmem:[%s2750_s2 + $0x200] sm:$0xff] }
  0x39   : > { %1296 = vmatpush.bf16.msrb.mxu3 %v2126_v18  ;;  %v2106_v18 = vld [vmem:[%s2750_s2 + $0x148] sm:$0xff] }
  0x3b   : > { %562 = vmatpush.bf16.msrb.mxu1 %v2069_v15  ;;  %945 = vmatpush.bf16.msrb.mxu0 %v2101_v19  ;;  %v2107_v15 = vld [vmem:[%s2750_s2 + $0x150] sm:$0xff]  ;;  %v2132_v19 = vld [vmem:[%s2750_s2 + $0x218] sm:$0xff] }
  0x3c   : > { %1167 = vmatpush.bf16.msrb.mxu2 %v2117_v20  ;;  %v2121_v20 = vld [vmem:[%s2750_s2 + $0x1c0] sm:$0xff] }
  0x3d   : > { %1297 = vmatpush.bf16.msrb.mxu3 %v2125_v11 }
  0x3e   : > { %481 = vmatmul.bf16.gmra.mxu1 %v2527_v30  ;;  %471 = vmatmul.bf16.gmra.mxu0 %v403_v31 }
  0x3f   : > { %563 = vmatpush.bf16.msrb.mxu1 %v2068_v28  ;;  %946 = vmatpush.bf16.msrb.mxu0 %v2100_v29  ;;  %v2130_v29 = vld [vmem:[%s2750_s2 + $0x208] sm:$0xff] }
  0x40   : > { %1168 = vmatpush.bf16.msrb.mxu2 %v2116_v38  ;;  %825 = vmatmul.bf16.gmra.mxu3 %v2540_v37  ;;  %v2669_v38 = vld [vmem:[%s2332_s28 + $0x2c] sm:$0x1] }
  0x41   : > { %717 = vmatmul.bf16.gmra.mxu2 %v2529_v32  ;;  %1298 = vmatpush.bf16.msrb.mxu3 %v2124_v47  ;;  %v869_v41 = vshll.u32 %v2669_v38, 16  ;;  %v985_v13 = vrot.slane %v2669_v38, 5 }
  0x43   : > { %564 = vmatpush.bf16.msrb.mxu1 %v2067_v34  ;;  %947 = vmatpush.bf16.msrb.mxu0 %v2099_v36  ;;  %v855_v34 = vrot.slane %v853_v26, 5 }
  0x44   : > { %1169 = vmatpush.bf16.msrb.mxu2 %v2115_v44 }
  0x45   : > { %1299 = vmatpush.bf16.msrb.mxu3 %v2123_v1 }
  0x47   : > { %565 = vmatpush.bf16.msrb.mxu1 %v2066_v39  ;;  %948 = vmatpush.bf16.msrb.mxu0 %v2098_v46  ;;  %v871_v46 = vrot.slane %v869_v41, 5 }
  0x48   : > { %1170 = vmatpush.bf16.msrb.mxu2 %v2114_v63 }
  0x49   : > { %1300 = vmatpush.bf16.msrb.mxu3 %v2122_v7 }
  0x4b   : > { %566 = vmatpush.bf16.msrb.mxu1 %v2065_v10  ;;  %949 = vmatpush.bf16.msrb.mxu0 %v2097_v51 }
  0x4c   : > { %1171 = vmatpush.bf16.msrb.mxu2 %v2113_v5 }
  0x4d   : > { %1301 = vmatpush.bf16.msrb.mxu3 %v2121_v20 }
  0x4e   : > { %567 = vmatmul.bf16.vlgmr.msrb.gmra.mxu1 %v2063_v57  ;;  %950 = vmatmul.bf16.vlgmr.msrb.gmra.mxu0 %v403_v31  ;;  %v852_v31 = vrot.slane %v850_v25, 4 }
  0x4f   : > { %1056 = vmatpush.bf16.msra.mxu1 %v2112_v50  ;;  %1408 = vmatpush.bf16.msra.mxu0 %v2136_v52  ;;  %v259_v50 = vld [vmem:[%s2360_s19 + $0xc] sm:$0xf] }
  0x50   : > { %830 = vmatmul.bf16.gmra.mxu3 %v2597_v0  ;;  %2145 = vmatpush.bf16.msra.mxu2 %v2136_v52  ;;  %v856_v11 = vor.u32 %v855_v34, %v852_v31  ;;  %v1202_v51 = vshrl.u32 %v259_v50, 16  ;;  %v1205_v52 = vshll.u32 %v259_v50, 16  ;;  %v2008_v40 = vrot.slane %v259_v50, 9 }
  0x51   : > { %722 = vmatmul.bf16.gmra.mxu2 %v2584_v58 }
  0x52   : > { %v857_v43 = vrot.slane %v856_v11, 4  ;;  %v1207_v57 = vrot.slane %v1205_v52, 5 }
  0x53   : > { %1057 = vmatpush.bf16.msra.mxu1 %v2111_v56  ;;  %1409 = vmatpush.bf16.msra.mxu0 %v2135_v59  ;;  %v1204_v56 = vrot.slane %v1202_v51, 4 }
  0x54   : > { %2146 = vmatpush.bf16.msra.mxu2 %v2135_v59 }
  0x55   : > { %v1208_v63 = vor.u32 %v1207_v57, %v1204_v56 }
  0x57   : > { %1058 = vmatpush.bf16.msra.mxu1 %v2110_v62  ;;  %1410 = vmatpush.bf16.msra.mxu0 %v2134_v53  ;;  %v261_v62 = vld [vmem:[%s2360_s19 + $0x14] sm:$0x1] }
  0x58   : > { %2147 = vmatpush.bf16.msra.mxu2 %v2134_v53  ;;  %v1209_v53 = vrot.slane %v1208_v63, 4  ;;  %v1337_v14 = vrot.slane %v261_v62, 5 }
  0x5b   : > { %1059 = vmatpush.bf16.msra.mxu1 %v2109_v6  ;;  %1411 = vmatpush.bf16.msra.mxu0 %v2133_v45 }
  0x5c   : > { %2148 = vmatpush.bf16.msra.mxu2 %v2133_v45 }
  0x5e   : > { %572 = vmatmul.bf16.gmra.mxu1 %v2479_v60  ;;  %955 = vmatmul.bf16.gmra.mxu0 %v2450_v33  ;;  %v2652_v60 = vld [vmem:[%s2332_s28 + $0x28] sm:$0xf]  ;;  %s1609_s28 = sshll.u32 %s2767_s13, 2 }
  0x5f   : > { %1060 = vmatpush.bf16.msra.mxu1 %v2108_v9  ;;  %1412 = vmatpush.bf16.msra.mxu0 %v2132_v19  ;;  %v859_v27 = vshll.u32 %v2652_v60, 16  ;;  %v863_v28 = vshrl.u32 %v2652_v60, 16  ;;  %v982_v7 = vrot.slane %v2652_v60, 5 }
  0x60   : > { %835 = vmatmul.bf16.gmra.mxu3 %v2634_v17  ;;  %2149 = vmatpush.bf16.msra.mxu2 %v2132_v19 }
  0x61   : > { %727 = vmatmul.bf16.gmra.mxu2 %v2631_v16  ;;  %v861_v35 = vrot.slane %v859_v27, 5  ;;  %v865_v36 = vrot.slane %v863_v28, 4  ;;  %v984_v9 = vrot.slane %v982_v7, 4 }
  0x63   : > { %1061 = vmatpush.bf16.msra.mxu1 %v2107_v15  ;;  %1413 = vmatpush.bf16.msra.mxu0 %v2131_v23  ;;  %v866_v39 = vor.u32 %v865_v36, %v861_v35  ;;  %v862_v47 = vsel %vm2373_vm4, %v857_v43, %v861_v35 }
  0x64   : > { %2150 = vmatpush.bf16.msra.mxu2 %v2131_v23  ;;  %v890_v12 = vunpack.c.l.b16 %v862_v47 }
  0x65   : > { %v867_v44 = vrot.slane %v866_v39, 4 }
  0x67   : > { %1062 = vmatpush.bf16.msra.mxu1 %v2106_v18  ;;  %1414 = vmatpush.bf16.msra.mxu0 %v2130_v29  ;;  %v872_v10 = vsel %vm2373_vm4, %v867_v44, %v871_v46  ;;  %v986_v18 = vsel %vm2385_vm5, %v984_v9, %v985_v13 }
  0x68   : > { %2151 = vmatpush.bf16.msra.mxu2 %v2130_v29  ;;  %v891_v49 = vunpack.c.l.b16 %v872_v10  ;;  %v1005_v22 = vunpack.c.l.b16 %v986_v18 }
  0x6b   : > { %1063 = vmatpush.bf16.msra.mxu1 %v2105_v24  ;;  %1415 = vmatpush.bf16.msra.mxu0 %v2129_v42 }
  0x6c   : > { %2152 = vmatpush.bf16.msra.mxu2 %v2129_v42 }
  0x6e   : > { %577 = vmatmul.bf16.gmra.mxu1 %v2540_v37  ;;  %960 = vmatmul.bf16.gmra.mxu0 %v2527_v30 }
  0x70   : > { %1302 = vmatmul.bf16.vlgmr.msrb.gmra.mxu3 %v2450_v33  ;;  %v260_v33 = vld [vmem:[%s2360_s19 + $0x10] sm:$0xf] }
  0x71   : > { %1172 = vmatmul.bf16.vlgmr.msrb.gmra.mxu2 %v2540_v37  ;;  %v892_v37 = vpack.c.b16 %v891_v49, %v890_v12  ;;  %v1211_v54 = vshll.u32 %v260_v33, 16  ;;  %v1215_v55 = vshrl.u32 %v260_v33, 16  ;;  %v1334_v45 = vrot.slane %v260_v33, 5 }
  0x73   : > { %v1213_v59 = vrot.slane %v1211_v54, 5  ;;  %v1217_v61 = vrot.slane %v1215_v55, 4  ;;  %v1336_v15 = vrot.slane %v1334_v45, 4 }
  0x75   : > { %v1214_v3 = vsel %vm2373_vm4, %v1209_v53, %v1213_v59  ;;  %v1338_v19 = vsel %vm2385_vm5, %v1336_v15, %v1337_v14 }
  0x76   : > { %v1242_v5 = vunpack.c.l.b16 %v1214_v3  ;;  %v1357_v23 = vunpack.c.l.b16 %v1338_v19 }
  0x7e   : > { %582 = vmatmul.bf16.gmra.mxu1 %v2597_v0  ;;  %965 = vmatmul.bf16.gmra.mxu0 %v892_v37 }
  0x80   : > { %1307 = vmatmul.bf16.gmra.mxu3 %v2527_v30  ;;  %v1218_v30 = vor.u32 %v1217_v61, %v1213_v59 }
  0x81   : > { %1177 = vmatmul.bf16.gmra.mxu2 %v2597_v0  ;;  %v1221_v0 = vshll.u32 %v261_v62, 16 }
  0x82   : > { %v1219_v1 = vrot.slane %v1218_v30, 4 }
  0x83   : > { %v1223_v2 = vrot.slane %v1221_v0, 5 }
  0x85   : > { %v1224_v4 = vsel %vm2373_vm4, %v1219_v1, %v1223_v2 }
  0x86   : > { %v1243_v6 = vunpack.c.l.b16 %v1224_v4 }
  0x88   : > { %v1244_v21 = vpack.c.b16 %v1243_v6, %v1242_v5 }
  0x8e   : > { %1064 = vmatmul.bf16.vlgmr.msra.gmra.mxu1 %v2529_v32  ;;  %1416 = vmatmul.bf16.vlgmr.msra.gmra.mxu0 %v2584_v58  ;;  %v2064_v32 = vld [vmem:[%s2360_s19 + $0xc] sm:$0xff]  ;;  %s241_s19 = sadd.s32 %s1609_s28, %s2771_s12 }
  0x8f   : > { %s1610_s4 = sshll.u32 %s241_s19, 1 }
  0x90   : > { %1312 = vmatmul.bf16.gmra.mxu3 %v892_v37  ;;  %s243_s7 = scalar_lea.vmem %s2751_s3, %s1610_s4 }
  0x91   : > { %1182 = vmatmul.bf16.gmra.mxu2 %v2634_v17  ;;  %v983_v17 = vsel %vm2385_vm5, %v1859_v8, %v982_v7 }
  0x92   : > { %v1004_v20 = vunpack.c.l.b16 %v983_v17 }
  0x94   : > { %v1006_v24 = vpack.c.b16 %v1005_v22, %v1004_v20 }
  0x9e   : > { %1069 = vmatmul.bf16.gmra.mxu1 %v2584_v58  ;;  %1421 = vmatmul.bf16.gmra.mxu0 %v2631_v16  ;;  %v1335_v58 = vsel %vm2385_vm5, %v2008_v40, %v1334_v45 }
  0x9f   : > { %v1356_v60 = vunpack.c.l.b16 %v1335_v58 }
  0xa0   : > { %1317 = vmatmul.bf16.gmra.mxu3 %v1244_v21 }
  0xa1   : > { %1187 = vmatmul.bf16.gmra.mxu2 %v2064_v32  ;;  %v1358_v27 = vpack.c.b16 %v1357_v23, %v1356_v60 }
  0xab   : > { %v477_v25 = vpop.f32.mrf.mxu1  ;;  %v467_v26 = vpop.f32.mrf.mxu0 }
  0xae   : > { %1074 = vmatmul.bf16.gmra.mxu1 %v2631_v16  ;;  %1426 = vmatmul.bf16.gmra.mxu0 %v1006_v24 }
  0xb1   : > { %1431 = vmatmul.bf16.vlgmr.msra.gmra.mxu2 %v1358_v27 }
  0xb3   : > { %v479_v29 = vpop.f32.mrf.mxu1  ;;  %v469_v31 = vpop.f32.mrf.mxu0 }
  0xb4   : > { %v713_v28 = vpop.f32.mrf.mxu2  ;;  %v821_v34 = vpop.f32.mrf.mxu3 }
  0xbb   : > { %v482_v36 = vpop.f32.mrf.mxu1  ;;  %v472_v48 = vpop.f32.mrf.mxu0 }
  0xbc   : > { %v715_v35 = vpop.f32.mrf.mxu2  ;;  %v823_v38 = vpop.f32.mrf.mxu3 }
  0xbe   : > { %1079 = vmatmul.bf16.gmra.mxu1 %v1006_v24 }
  0xc3   : > { %v484_v39 = vpop.f32.mrf.mxu1  ;;  %v474_v41 = vpop.f32.mrf.mxu0 }
  0xc4   : > { %v718_v11 = vpop.f32.mrf.mxu2  ;;  %v826_v42 = vpop.f32.mrf.mxu3 }
  0xcb   : > { %v568_v44 = vpop.f32.mrf.mxu1  ;;  %v951_v46 = vpop.f32.mrf.mxu0 }
  0xcc   : > { %v720_v43 = vpop.f32.mrf.mxu2  ;;  %v569_v47 = vadd.f32 %v568_v44, %v467_v26  ;;  %v828_v10 = vpop.f32.mrf.mxu3 }
  0xce   : > { %v733_v16 = vadd.f32 %v713_v28, %v569_v47 }
  0xd0   : > { %v841_v12 = vadd.f32 %v821_v34, %v733_v16 }
  0xd2   : > { %v971_v49 = vadd.f32 %v951_v46, %v841_v12 }
  0xd3   : > { %v570_v50 = vpop.f32.mrf.mxu1  ;;  %v953_v33 = vpop.f32.mrf.mxu0 }
  0xd4   : > { %v723_v37 = vpop.f32.mrf.mxu2  ;;  %v571_v51 = vadd.f32 %v570_v50, %v469_v31  ;;  %v831_v55 = vpop.f32.mrf.mxu3 }
  0xd6   : > { %v734_v52 = vadd.f32 %v715_v35, %v571_v51 }
  0xd8   : > { %v842_v54 = vadd.f32 %v823_v38, %v734_v52 }
  0xda   : > { %v972_v56 = vadd.f32 %v953_v33, %v842_v54 }
  0xdb   : > { %v573_v59 = vpop.f32.mrf.mxu1  ;;  %v956_v61 = vpop.f32.mrf.mxu0 }
  0xdc   : > { %v725_v57 = vpop.f32.mrf.mxu2  ;;  %v574_v62 = vadd.f32 %v573_v59, %v472_v48  ;;  %v833_v1 = vpop.f32.mrf.mxu3 }
  0xde   : > { %v735_v63 = vadd.f32 %v718_v11, %v574_v62 }
  0xe0   : > { %v843_v30 = vadd.f32 %v826_v42, %v735_v63 }
  0xe2   : > { %v973_v0 = vadd.f32 %v956_v61, %v843_v30 }
  0xe3   : > { %v575_v2 = vpop.f32.mrf.mxu1  ;;  %v958_v3 = vpop.f32.mrf.mxu0 }
  0xe4   : > { %v728_v53 = vpop.f32.mrf.mxu2  ;;  %v576_v4 = vadd.f32 %v575_v2, %v474_v41  ;;  %v2711_v9 = vpop.f32.mrf.mxu3 }
  0xe6   : > { %v736_v5 = vadd.f32 %v720_v43, %v576_v4 }
  0xe8   : > { %v844_v6 = vadd.f32 %v828_v10, %v736_v5 }
  0xea   : > { %v974_v32 = vadd.f32 %v958_v3, %v844_v6 }
  0xeb   : > { %v578_v45 = vpop.f32.mrf.mxu1  ;;  %v961_v21 = vpop.f32.mrf.mxu0 }
  0xec   : > { %v730_v7 = vpop.f32.mrf.mxu2  ;;  %v579_v8 = vadd.f32 %v578_v45, %v477_v25  ;;  %v2713_v19 = vpop.f32.mrf.mxu3 }
  0xee   : > { %v737_v13 = vadd.f32 %v723_v37, %v579_v8 }
  0xf0   : > { %v845_v14 = vadd.f32 %v831_v55, %v737_v13 }
  0xf2   : > { %v975_v2 = vadd.f32 %v961_v21, %v845_v14 }
  0xf3   : > { %v580_v15 = vpop.f32.mrf.mxu1  ;;  %v963_v17 = vpop.f32.mrf.mxu0 }
  0xf4   : > { %v1173_v40 = vpop.f32.mrf.mxu2  ;;  %v581_v18 = vadd.f32 %v580_v15, %v479_v29  ;;  %v1303_v27 = vpop.f32.mrf.mxu3 }
  0xf6   : > { %v738_v58 = vadd.f32 %v725_v57, %v581_v18 }
  0xf8   : > { %v846_v20 = vadd.f32 %v833_v1, %v738_v58 }
  0xfa   : > { %v976_v13 = vadd.f32 %v963_v17, %v846_v20 }
  0xfb   : > { %v583_v60 = vpop.f32.mrf.mxu1  ;;  %v966_v23 = vpop.f32.mrf.mxu0 }
  0xfc   : > { %v1175_v22 = vpop.f32.mrf.mxu2  ;;  %v584_v24 = vadd.f32 %v583_v60, %v482_v36  ;;  %v1305_v48 = vpop.f32.mrf.mxu3 }
  0xfe   : > { %v739_v26 = vadd.f32 %v728_v53, %v584_v24 }
 0x103   : > { %v585_v25 = vpop.f32.mrf.mxu1  ;;  %v2715_v31 = vpop.f32.mrf.mxu0 }
 0x104   : > { %v1178_v28 = vpop.f32.mrf.mxu2  ;;  %v586_v34 = vadd.f32 %v585_v25, %v484_v39  ;;  %v1308_v47 = vpop.f32.mrf.mxu3 }
 0x106   : > { %v740_v35 = vadd.f32 %v730_v7, %v586_v34 }
 0x10b   : > { %v1065_v38 = vpop.f32.mrf.mxu1  ;;  %v1417_v11 = vpop.f32.mrf.mxu0 }
 0x10c   : > { %v1180_v29 = vpop.f32.mrf.mxu2  ;;  %v1085_v41 = vadd.f32 %v1065_v38, %v971_v49  ;;  %v1310_v54 = vpop.f32.mrf.mxu3 }
 0x10e   : > { %v1193_v42 = vadd.f32 %v1173_v40, %v1085_v41 }
 0x110   : > { %v1323_v16 = vadd.f32 %v1303_v27, %v1193_v42 }
 0x112   : > { %v2717_v37 = vadd.f32 %v1417_v11, %v1323_v16  ;;  %v848_v11 = vadd.f32 %v2713_v19, %v740_v35 }
 0x113   : > { %v1067_v43 = vpop.f32.mrf.mxu1  ;;  %v1419_v44 = vpop.f32.mrf.mxu0 }
 0x114   : > { %v1086_v46 = vadd.f32 %v1067_v43, %v972_v56  ;;  %v1183_v10 = vpop.f32.mrf.mxu2  ;;  %v1313_v1 = vpop.f32.mrf.mxu3  ;;  %v978_v41 = vadd.f32 %v2715_v31, %v848_v11 }
 0x116   : > { %v1194_v36 = vadd.f32 %v1175_v22, %v1086_v46 }
 0x118   : > { %v1324_v12 = vadd.f32 %v1305_v48, %v1194_v36 }
 0x11a   : > { %v2719_v50 = vadd.f32 %v1419_v44, %v1324_v12 }
 0x11b   : > { %v1070_v39 = vpop.f32.mrf.mxu1  ;;  %v1422_v33 = vpop.f32.mrf.mxu0 }
 0x11c   : > { %v1445_v51 = vadd.f32 %v2719_v50, %v2717_v37  ;;  %v1087_v52 = vadd.f32 %v1070_v39, %v973_v0  ;;  %v1185_v57 = vpop.f32.mrf.mxu2  ;;  %v1315_v15 = vpop.f32.mrf.mxu3 }
 0x11e   : > { %v1195_v49 = vadd.f32 %v1178_v28, %v1087_v52 }
 0x120   : > { %v1325_v55 = vadd.f32 %v1308_v47, %v1195_v49 }
 0x122   : > { %v1439_v56 = vadd.f32 %v1422_v33, %v1325_v55 }
 0x123   : > { %v1072_v59 = vpop.f32.mrf.mxu1  ;;  %v1424_v61 = vpop.f32.mrf.mxu0 }
 0x124   : > { %v1446_v62 = vadd.f32 %v1445_v51, %v1439_v56  ;;  %v1088_v63 = vadd.f32 %v1072_v59, %v974_v32  ;;  %v1188_v4 = vpop.f32.mrf.mxu2  ;;  %v847_v32 = vadd.f32 %v2711_v9, %v739_v26  ;;  %v1318_v38 = vpop.f32.mrf.mxu3 }
 0x126   : > { %v1196_v30 = vadd.f32 %v1180_v29, %v1088_v63  ;;  %v977_v14 = vadd.f32 %v966_v23, %v847_v32 }
 0x128   : > { %v1326_v53 = vadd.f32 %v1310_v54, %v1196_v30 }
 0x12a   : > { %v1440_v3 = vadd.f32 %v1424_v61, %v1326_v53 }
 0x12b   : > { %v1075_v5 = vpop.f32.mrf.mxu1  ;;  %v1427_v45 = vpop.f32.mrf.mxu0 }
 0x12c   : > { %v1447_v6 = vadd.f32 %v1446_v62, %v1440_v3  ;;  %v1089_v7 = vadd.f32 %v1075_v5, %v975_v2  ;;  %v1190_v60 = vpop.f32.mrf.mxu2  ;;  %v1320_v46 = vpop.f32.mrf.mxu3 }
 0x12e   : > { %v1197_v0 = vadd.f32 %v1183_v10, %v1089_v7 }
 0x130   : > { %v1327_v8 = vadd.f32 %v1313_v1, %v1197_v0 }
 0x132   : > { %v1441_v40 = vadd.f32 %v1427_v45, %v1327_v8 }
 0x133   : > { %v1077_v18 = vpop.f32.mrf.mxu1  ;;  %v1429_v27 = vpop.f32.mrf.mxu0 }
 0x134   : > { %v1448_v58 = vadd.f32 %v1447_v6, %v1441_v40  ;;  %v1090_v22 = vadd.f32 %v1077_v18, %v976_v13  ;;  %v1432_v20 = vpop.f32.mrf.mxu2 }
 0x136   : > { %v1198_v24 = vadd.f32 %v1185_v57, %v1090_v22 }
 0x138   : > { %v1328_v21 = vadd.f32 %v1315_v15, %v1198_v24 }
 0x13a   : > { %v1442_v28 = vadd.f32 %v1429_v27, %v1328_v21 }
 0x13b   : > { %v1080_v25 = vpop.f32.mrf.mxu1 }
 0x13c   : > { %v1449_v34 = vadd.f32 %v1448_v58, %v1442_v28  ;;  %v1091_v48 = vadd.f32 %v1080_v25, %v977_v14  ;;  %v1434_v23 = vpop.f32.mrf.mxu2 }
 0x13e   : > { %v1199_v17 = vadd.f32 %v1188_v4, %v1091_v48 }
 0x140   : > { %v1329_v29 = vadd.f32 %v1318_v38, %v1199_v17 }
 0x142   : > { %v1443_v42 = vadd.f32 %v1432_v20, %v1329_v29 }
 0x143   : > { %v1082_v43 = vpop.f32.mrf.mxu1 }
 0x144   : > { %v1450_v44 = vadd.f32 %v1449_v34, %v1443_v42  ;;  %v1092_v9 = vadd.f32 %v1082_v43, %v978_v41 }
 0x146   : > { %v1200_v26 = vadd.f32 %v1190_v60, %v1092_v9 }
 0x148   : > { %v1330_v47 = vadd.f32 %v1320_v46, %v1200_v26 }
 0x14a   : > { %v1444_v16 = vadd.f32 %v1434_v23, %v1330_v47 }
 0x14c   : > { %v1451_v36 = vadd.f32 %v1450_v44, %v1444_v16 }
 0x14e   : > { %v1452_v10 = vrot.slane %v1451_v36, 4 }
 0x150   : > { %v1453_v12 = vadd.f32 %v1452_v10, %v1451_v36 }
 0x152   : > { %v1454_v39 = vrot.slane %v1453_v12, 2 }
 0x154   : > { %v1455_v33 = vadd.f32 %v1454_v39, %v1453_v12 }
 0x156   : > { %v1456_v19 = vrot.slane %v1455_v33, 1 }
 0x158   : > { %v1457_v35 = vadd.f32 %v1456_v19, %v1455_v33 }
 0x15a   : > { %v1458_v51 = vmul.f32 0.015625, %v1457_v35 }
 0x15c   : > { %v1459_v52 = vsub.f32 %v2717_v37, %v1458_v51  ;;  %v1460_v31 = vsub.f32 %v2719_v50, %v1458_v51  ;;  %v1461_v49 = vsub.f32 %v1439_v56, %v1458_v51  ;;  %v1462_v54 = vsub.f32 %v1440_v3, %v1458_v51 }
 0x15d   : > { %v1463_v55 = vsub.f32 %v1441_v40, %v1458_v51  ;;  %v1464_v57 = vsub.f32 %v1442_v28, %v1458_v51  ;;  %v1465_v59 = vsub.f32 %v1443_v42, %v1458_v51  ;;  %v1466_v61 = vsub.f32 %v1444_v16, %v1458_v51 }
 0x15e   : > { %v1467_v62 = vmul.f32 %v1459_v52, %v1459_v52  ;;  %v1468_v63 = vmul.f32 %v1460_v31, %v1460_v31  ;;  %v1469_v30 = vmul.f32 %v1461_v49, %v1461_v49  ;;  %v1470_v1 = vmul.f32 %v1462_v54, %v1462_v54 }
 0x15f   : > { %v1471_v4 = vmul.f32 %v1463_v55, %v1463_v55  ;;  %v1472_v6 = vmul.f32 %v1464_v57, %v1464_v57  ;;  %v1473_v7 = vmul.f32 %v1465_v59, %v1465_v59  ;;  %v1474_v56 = vmul.f32 %v1466_v61, %v1466_v61 }
 0x160   : > { %v1475_v53 = vadd.f32 %v1468_v63, %v1467_v62 }
 0x162   : > { %v1476_v2 = vadd.f32 %v1475_v53, %v1469_v30 }
 0x164   : > { %v1477_v5 = vadd.f32 %v1476_v2, %v1470_v1 }
 0x166   : > { %v1478_v37 = vadd.f32 %v1477_v5, %v1471_v4 }
 0x168   : > { %v1479_v50 = vadd.f32 %v1478_v37, %v1472_v6 }
 0x16a   : > { %v1480_v3 = vadd.f32 %v1479_v50, %v1473_v7 }
 0x16c   : > { %v1481_v45 = vadd.f32 %v1480_v3, %v1474_v56 }
 0x16e   : > { %v1482_v0 = vrot.slane %v1481_v45, 4 }
 0x170   : > { %v1483_v8 = vadd.f32 %v1482_v0, %v1481_v45 }
 0x172   : > { %v1484_v13 = vrot.slane %v1483_v8, 2 }
 0x174   : > { %v1485_v40 = vadd.f32 %v1484_v13, %v1483_v8 }
 0x176   : > { %v1486_v15 = vrot.slane %v1485_v40, 1 }
 0x178   : > { %v1487_v18 = vadd.f32 %v1486_v15, %v1485_v40 }
 0x17a   : > { %v1489_v58 = vsel %vm1488_vm6, %v1457_v35, %v1487_v18 }
 0x17b   : > { %1490 = vst [vmem:[%s243_s7] sm:$0x3] %v1489_v58 }
 0x17c PF: > { %s13_s16 = sadd.s32 1, %s2235_s16   ;;  %s2756_s12 = smov %s2227_s14 }
 0x17d   : > { %p10_p8 = scmp.ge.s32.totalorder %s13_s16, 10   ;;  %s2757_s13 = smov %s2231_s15 }
 0x17e   : > { %s2758_s14 = smov %s2761_s17  ;;  %s2759_s15 = smov %s2765_s18 }
 0x17f   :  { %12 = sbr.rel (!%p10_p8) target bundleno = 3 (0x3), region = 73 }

// kernel: residual_block.3
= control target key start
LH: loop header
LB: loop body
LE: loop exit
PB: predicated region body
PF: predicated region fallthrough
CT: control target
= control target key end

     0   :  { %s2374_s18 = smov 0   ;;  %s2376_s19 = smov 0   ;;  %s2963_s0 = inlined_call_operand.vmem [shape: bf16[2,16,18,128], index: 0, kind: input, shape index: {}]   ;;  %s2964_s1 = inlined_call_operand.vmem [shape: bf16[2,4,2,18,128], index: 1, kind: input, shape index: {}]   ;;  %s2965_s2 = inlined_call_operand.vmem [shape: bf16[9,128,128], index: 2, kind: input, shape index: {}]   ;;  %s2966_s3 = inlined_call_operand.vmem [shape: f32[1,128], index: 3, kind: input, shape index: {}]   ;;  %s2967_s4 = inlined_call_operand.vmem [shape: f32[1,128], index: 4, kind: input, shape index: {}]   ;;  %s2968_s5 = inlined_call_operand.vmem [shape: f32[2,16,16,128], index: 5, kind: output, shape index: {}]  }
   0x1   :  { %s2378_s20 = smov 0   ;;  %s2380_s21 = smov 0  }
   0x2   :  { %s2382_s22 = smov 0  }
   0x3 LB: > { %s24_s23 = sadd.s32 1, %s2334_s20  ;;  %s27_s24 = sadd.s32 1, %s2338_s21  ;;  %s2342_s22 = sphi %s2382_s22, %s15_s22   ;;  %s2338_s21 = sphi %s2380_s21, %s2976_s21   ;;  %s2334_s20 = sphi %s2378_s20, %s2975_s20   ;;  %s2330_s19 = sphi %s2376_s19, %s2974_s19   ;;  %s2326_s18 = sphi %s2374_s18, %s2973_s18  }
   0x4   : > { %p25_p0 = scmp.ge.s32.totalorder %s24_s23, 4  ;;  %p1708_p1 = scmp.ge.s32.totalorder %s2342_s22, 1 }
   0x5   : > { %p225_p2 = scmp.lt.s32.totalorder %s2342_s22, 9 }
   0x6   : > { %s2978_s23 = smov (%p25_p0, %s24_s23), 0  ;;  %s2980_s24 = smov (!%p25_p0, %s27_s24), %s2338_s21 }
   0x7   : > { %p226_p3 = pnand %p1708_p1, %p225_p2  ;;  %p29_p4 = scmp.ge.s32.totalorder %s2980_s24, 2 }
   0x8   : > { %s1709_s27 = sshll.u32 (!%p226_p3), %s2326_s18, 2  ;;  %p273_p5 = scmp.lt.s32.totalorder (!%p226_p3), %s2330_s19, 1 }
   0x9   : > { %s2982_s24 = smov (%p29_p4, %s2980_s24), 0  ;;  %229 = sbr.rel (%p226_p3) target bundleno = 342 (0x156), region = 40 }
   0xa   : > { %p275_p6 = scmp.lt.s32.totalorder (!%p226_p3), %s1709_s27, 15  ;;  %p285_p7 = scmp.lt.s32.totalorder (!%p226_p3), %s2326_s18, 3 }
   0xe   : > { %v2185_v0 = vld [vmem:[%s2965_s2 + $0x78] sm:$0xff]  ;;  %v2184_v2 = vld [vmem:[%s2965_s2 + $0x70] sm:$0xff]  ;;  %s2984_s19 = smov (!%p273_p5, %s2330_s19), 1  ;;  %s2986_s27 = smov (!%p275_p6, %s1709_s27), 15  ;;  %v2183_v6 = vld [vmem:[%s2965_s2 + $0x68] sm:$0xff]  ;;  %vm651_vm2 = vcmask 1042432  }
   0xf   : > { %v2193_v1 = vld [vmem:[%s2965_s2 + $0xb8] sm:$0xff]  ;;  %2242 = vmatpush.bf16.msra.mxu1 %v2185_v0  ;;  %517 = vmatpush.bf16.msra.mxu0 %v2185_v0  ;;  %v2192_v3 = vld [vmem:[%s2965_s2 + $0xb0] sm:$0xff]  ;;  %s2259_s11 = smul.u32 48, %s2984_s19  ;;  %s2988_s18 = smov (!%p285_p7, %s2326_s18), 3  ;;  %v2191_v7 = vld [vmem:[%s2965_s2 + $0xa8] sm:$0xff]  ;;  %vm652_vm3 = vcmask 1046532  }
  0x10   : > { %763 = vmatpush.bf16.msra.mxu2 %v2193_v1  ;;  %v2201_v4 = vld [vmem:[%s2965_s2 + $0xf8] sm:$0xff]  ;;  %v2200_v5 = vld [vmem:[%s2965_s2 + $0xf0] sm:$0xff]  ;;  %s2258_s14 = smul.u32 3, %s2986_s27  ;;  %v2182_v8 = vld [vmem:[%s2965_s2 + $0x60] sm:$0xff]  ;;  %vm337_vm0 = vsmask.f32 3328 }
  0x11   : > { %871 = vmatpush.bf16.msra.mxu3 %v2201_v4  ;;  %s2261_s28 = smul.u32 24, %s2984_s19  ;;  %v2199_v9 = vld [vmem:[%s2965_s2 + $0xe8] sm:$0xff]  ;;  %v2190_v13 = vld [vmem:[%s2965_s2 + $0xa0] sm:$0xff]  ;;  %v2181_v18 = vld [vmem:[%s2965_s2 + $0x58] sm:$0xff]  ;;  %vm338_vm1 = vsmask.f32 7440 }
  0x12   : > { %s279_s26 = sadd.s32 %s2259_s11, %s2258_s14  ;;  %s2260_s30 = smul.u32 6, %s2988_s18  ;;  %v2198_v20 = vld [vmem:[%s2965_s2 + $0xe0] sm:$0xff]  ;;  %v2189_v30 = vld [vmem:[%s2965_s2 + $0x98] sm:$0xff]  ;;  %vm2487_vm4 = vmor %vm337_vm0, %vm338_vm1 }
  0x13   : > { %2243 = vmatpush.bf16.msra.mxu1 %v2184_v2  ;;  %518 = vmatpush.bf16.msra.mxu0 %v2184_v2  ;;  %s1710_s29 = sshll.u32 %s279_s26, 2  ;;  %v2197_v39 = vld [vmem:[%s2965_s2 + $0xd8] sm:$0xff]  ;;  %v2180_v46 = vld [vmem:[%s2965_s2 + $0x50] sm:$0xff]  ;;  %vm2502_vm5 = vmor %vm651_vm2, %vm652_vm3  ;;  %s1714_s11 = sshll.u32 %s2984_s19, 5 }
  0x14   : > { %764 = vmatpush.bf16.msra.mxu2 %v2192_v3  ;;  %s2449_s13 = scalar_lea.vmem %s2963_s0, %s1710_s29  ;;  %s289_s18 = sadd.s32 %s2261_s28, %s2260_s30  ;;  %v2188_v50 = vld [vmem:[%s2965_s2 + $0x90] sm:$0xff]  ;;  %v2179_v63 = vld [vmem:[%s2965_s2 + $0x48] sm:$0xff] }
  0x15   : > { %872 = vmatpush.bf16.msra.mxu3 %v2200_v5  ;;  %v2452_v10 = vld [vmem:[%s2449_s13 + $0xc] sm:$0xf]  ;;  %v2455_v11 = vld [vmem:[%s2449_s13 + $0x10] sm:$0xf]  ;;  %v2458_v12 = vld [vmem:[%s2449_s13 + $0x14] sm:$0x1] }
  0x16   : > { %v389_v14 = vshrl.u32 %v2452_v10, 16  ;;  %v392_v15 = vshll.u32 %v2452_v10, 16  ;;  %v398_v16 = vshll.u32 %v2455_v11, 16  ;;  %v402_v17 = vshrl.u32 %v2455_v11, 16  ;;  %s1711_s15 = sshll.u32 %s289_s18, 2  ;;  %v2196_v62 = vld [vmem:[%s2965_s2 + $0xd0] sm:$0xff] }
  0x17   : > { %2244 = vmatpush.bf16.msra.mxu1 %v2183_v6  ;;  %519 = vmatpush.bf16.msra.mxu0 %v2183_v6  ;;  %v408_v19 = vshll.u32 %v2458_v12, 16  ;;  %s2477_s30 = scalar_lea.vmem %s2964_s1, %s1711_s15  ;;  %v2495_v45 = vld [vmem:[%s2449_s13 + $0x18] sm:$0xf]  ;;  %v2518_v56 = vld [vmem:[%s2449_s13 + $0x1c] sm:$0xf]  ;;  %v2187_v3 = vld [vmem:[%s2965_s2 + $0x88] sm:$0xff] }
  0x18   : > { %765 = vmatpush.bf16.msra.mxu2 %v2191_v7  ;;  %v391_v21 = vrot.slane %v389_v14, 4  ;;  %v394_v22 = vrot.slane %v392_v15, 5  ;;  %v400_v23 = vrot.slane %v398_v16, 5  ;;  %v404_v24 = vrot.slane %v402_v17, 4  ;;  %v315_v25 = vld [vmem:[%s2477_s30] sm:$0xf] }
  0x19   : > { %873 = vmatpush.bf16.msra.mxu3 %v2199_v9  ;;  %v410_v26 = vrot.slane %v408_v19, 5  ;;  %v316_v27 = vld [vmem:[%s2477_s30 + $0x4] sm:$0xf]  ;;  %v317_v28 = vld [vmem:[%s2477_s30 + $0x8] sm:$0x1]  ;;  %v341_v29 = vshrl.u32 %v315_v25, 16 }
  0x1a   : > { %v395_v31 = vor.u32 %v394_v22, %v391_v21  ;;  %v405_v32 = vor.u32 %v404_v24, %v400_v23  ;;  %v344_v33 = vshll.u32 %v315_v25, 16  ;;  %v350_v34 = vshll.u32 %v316_v27, 16  ;;  %v2532_v2 = vld [vmem:[%s2449_s13] sm:$0xf]  ;;  %v2545_v15 = vld [vmem:[%s2449_s13 + $0x4] sm:$0xf] }
  0x1b   : > { %2245 = vmatpush.bf16.msra.mxu1 %v2182_v8  ;;  %520 = vmatpush.bf16.msra.mxu0 %v2182_v8  ;;  %v343_v36 = vrot.slane %v341_v29, 4  ;;  %v354_v37 = vshrl.u32 %v316_v27, 16  ;;  %v360_v38 = vshll.u32 %v317_v28, 16  ;;  %v1812_v40 = vrot.slane %v315_v25, 9  ;;  %v2553_v19 = vld [vmem:[%s2449_s13 + $0x20] sm:$0x1] }
  0x1c   : > { %766 = vmatpush.bf16.msra.mxu2 %v2190_v13  ;;  %v396_v41 = vrot.slane %v395_v31, 4  ;;  %v406_v42 = vrot.slane %v405_v32, 4  ;;  %v346_v43 = vrot.slane %v344_v33, 5  ;;  %v352_v44 = vrot.slane %v350_v34, 5  ;;  %v2178_v22 = vld [vmem:[%s2965_s2 + $0x40] sm:$0xff]  ;;  %v2209_v34 = vld [vmem:[%s2965_s2 + $0x138] sm:$0xff] }
  0x1d   : > { %874 = vmatpush.bf16.msra.mxu3 %v2198_v20  ;;  %v356_v47 = vrot.slane %v354_v37, 4  ;;  %v656_v49 = vrot.slane %v316_v27, 5  ;;  %v659_v53 = vrot.slane %v317_v28, 5  ;;  %v362_v55 = vrot.slane %v360_v38, 5  ;;  %v2186_v28 = vld [vmem:[%s2965_s2 + $0x80] sm:$0xff]  ;;  %v2225_v37 = vld [vmem:[%s2965_s2 + $0x1b8] sm:$0xff] }
  0x1e   : > { %v2511_v51 = vsel %vm2487_vm4, %v396_v41, %v400_v23  ;;  %v347_v52 = vor.u32 %v346_v43, %v343_v36  ;;  %v2515_v54 = vsel %vm2487_vm4, %v406_v42, %v410_v26  ;;  %v413_v57 = vshrl.u32 %v2495_v45, 16  ;;  %v2177_v23 = vld [vmem:[%s2965_s2 + $0x38] sm:$0xff]  ;;  %v2566_v29 = vld [vmem:[%s2449_s13 + $0x8] sm:$0x1]  ;;  %s1713_s18 = sshll.u32 %s2986_s27, 1 }
  0x1f   : > { %2246 = vmatpush.bf16.msra.mxu1 %v2181_v18  ;;  %521 = vmatpush.bf16.msra.mxu0 %v2181_v18  ;;  %v357_v59 = vor.u32 %v356_v47, %v352_v44  ;;  %v657_v60 = vsel %vm2502_vm5, %v1812_v40, %v656_v49  ;;  %v658_v61 = vrot.slane %v656_v49, 4  ;;  %v457_v0 = vunpack.c.l.b16 %v2511_v51  ;;  %v2195_v18 = vld [vmem:[%s2965_s2 + $0xc8] sm:$0xff]  ;;  %s299_s16 = sadd.s32 %s1714_s11, %s1713_s18 }
  0x20   : > { %767 = vmatpush.bf16.msra.mxu2 %v2189_v30  ;;  %v348_v58 = vrot.slane %v347_v52, 4  ;;  %v416_v1 = vshll.u32 %v2495_v45, 16  ;;  %v422_v7 = vshll.u32 %v2518_v56, 16  ;;  %v458_v8 = vunpack.c.l.b16 %v2515_v54  ;;  %s1715_s19 = sshll.u32 %s299_s16, 3 }
  0x21   : > { %875 = vmatpush.bf16.msra.mxu3 %v2197_v39  ;;  %v358_v5 = vrot.slane %v357_v59, 4  ;;  %v660_v6 = vsel %vm2502_vm5, %v658_v61, %v659_v53  ;;  %v699_v9 = vunpack.c.l.b16 %v657_v60  ;;  %v415_v13 = vrot.slane %v413_v57, 4  ;;  %v2208_v57 = vld [vmem:[%s2965_s2 + $0x130] sm:$0xff]  ;;  %s2902_s25 = scalar_lea.vmem %s2968_s5, %s1715_s19 }
  0x22   : > { %v353_v4 = vsel %vm2487_vm4, %v348_v58, %v352_v44  ;;  %v426_v14 = vshrl.u32 %v2518_v56, 16  ;;  %v418_v20 = vrot.slane %v416_v1, 5  ;;  %v365_v21 = vshrl.u32 %v2532_v2, 16  ;;  %v2224_v59 = vld [vmem:[%s2965_s2 + $0x1b0] sm:$0xff] }
  0x23   : > { %2247 = vmatpush.bf16.msra.mxu1 %v2180_v46  ;;  %522 = vmatpush.bf16.msra.mxu0 %v2180_v46  ;;  %v363_v16 = vsel %vm2487_vm4, %v358_v5, %v362_v55  ;;  %v453_v17 = vunpack.c.l.b16 %v353_v4  ;;  %v700_v25 = vunpack.c.l.b16 %v660_v6  ;;  %v424_v26 = vrot.slane %v422_v7, 5  ;;  %v2194_v46 = vld [vmem:[%s2965_s2 + $0xc0] sm:$0xff]  ;;  %v2233_v55 = vld [vmem:[%s2965_s2 + $0x1f8] sm:$0xff]  ;;  %v2175_v4 = vld [vmem:[%s2965_s2 + $0x28] sm:$0xff] }
  0x24   : > { %768 = vmatpush.bf16.msra.mxu2 %v2188_v50  ;;  %v454_v24 = vunpack.c.l.b16 %v363_v16  ;;  %v428_v27 = vrot.slane %v426_v14, 4  ;;  %v367_v30 = vrot.slane %v365_v21, 4  ;;  %v368_v31 = vshll.u32 %v2532_v2, 16  ;;  %v2176_v50 = vld [vmem:[%s2965_s2 + $0x30] sm:$0xff]  ;;  %v2231_v21 = vld [vmem:[%s2965_s2 + $0x1e8] sm:$0xff] }
  0x25   : > { %876 = vmatpush.bf16.msra.mxu3 %v2196_v62  ;;  %v374_v32 = vshll.u32 %v2545_v15, 16  ;;  %v2570_v33 = vpack.c.b16 %v458_v8, %v457_v0  ;;  %v432_v36 = vshll.u32 %v2553_v19, 16  ;;  %v378_v38 = vshrl.u32 %v2545_v15, 16  ;;  %v2599_v62 = vld [vmem:[%s2449_s13] sm:$0xff]  ;;  %v2232_v8 = vld [vmem:[%s2965_s2 + $0x1f0] sm:$0xff] }
  0x26   : > { %v461_v39 = vpack.c.b16 %v454_v24, %v453_v17  ;;  %v419_v40 = vor.u32 %v418_v20, %v415_v13  ;;  %v370_v41 = vrot.slane %v368_v31, 5  ;;  %v707_v43 = vpack.c.b16 %v700_v25, %v699_v9  ;;  %v2207_v9 = vld [vmem:[%s2965_s2 + $0x128] sm:$0xff]  ;;  %v2174_v17 = vld [vmem:[%s2965_s2 + $0x20] sm:$0xff]  ;;  %v2205_v31 = vld [vmem:[%s2965_s2 + $0x118] sm:$0xff] }
  0x27   : > { %2248 = vmatpush.bf16.msra.mxu1 %v2179_v63  ;;  %523 = vmatpush.bf16.msra.mxu0 %v2179_v63  ;;  %v376_v42 = vrot.slane %v374_v32, 5  ;;  %v429_v44 = vor.u32 %v428_v27, %v424_v26  ;;  %v380_v47 = vrot.slane %v378_v38, 4  ;;  %v384_v49 = vshll.u32 %v2566_v29, 16  ;;  %v2223_v13 = vld [vmem:[%s2965_s2 + $0x1a8] sm:$0xff] }
  0x28   : > { %769 = vmatpush.bf16.msra.mxu2 %v2187_v3  ;;  %v371_v52 = vor.u32 %v370_v41, %v367_v30  ;;  %v663_v53 = vrot.slane %v2545_v15, 5  ;;  %v420_v60 = vrot.slane %v419_v40, 4  ;;  %v434_v61 = vrot.slane %v432_v36, 5  ;;  %v2173_v30 = vld [vmem:[%s2965_s2 + $0x18] sm:$0xff]  ;;  %v2671_v40 = vld [vmem:[%s2449_s13 + $0xc] sm:$0xff] }
  0x29   : > { %877 = vmatpush.bf16.msra.mxu3 %v2195_v18  ;;  %v381_v58 = vor.u32 %v380_v47, %v376_v42  ;;  %v430_v63 = vrot.slane %v429_v44, 4  ;;  %v386_v3 = vrot.slane %v384_v49, 5  ;;  %v1813_v5 = vrot.slane %v2532_v2, 9  ;;  %v2221_v41 = vld [vmem:[%s2965_s2 + $0x198] sm:$0xff]  ;;  %v2220_v47 = vld [vmem:[%s2965_s2 + $0x190] sm:$0xff]  ;;  %v2203_v49 = vld [vmem:[%s2965_s2 + $0x108] sm:$0xff] }
  0x2a   : > { %v372_v0 = vrot.slane %v371_v52, 4  ;;  %v665_v6 = vrot.slane %v663_v53, 4  ;;  %v666_v7 = vrot.slane %v2566_v29, 5  ;;  %v2618_v2 = vsel %vm2487_vm4, %v420_v60, %v424_v26  ;;  %v2216_v60 = vld [vmem:[%s2965_s2 + $0x170] sm:$0xff] }
  0x2b   : > { %2249 = vmatpush.bf16.msra.mxu1 %v2178_v22  ;;  %524 = vmatpush.bf16.msra.mxu0 %v2178_v22  ;;  %v382_v1 = vrot.slane %v381_v58, 4  ;;  %v2622_v14 = vsel %vm2487_vm4, %v430_v63, %v434_v61  ;;  %v664_v18 = vsel %vm2502_vm5, %v1813_v5, %v663_v53  ;;  %v2206_v22 = vld [vmem:[%s2965_s2 + $0x120] sm:$0xff]  ;;  %v459_v24 = vunpack.c.l.b16 %v2618_v2  ;;  %v2217_v53 = vld [vmem:[%s2965_s2 + $0x178] sm:$0xff] }
  0x2c   : > { %770 = vmatpush.bf16.msra.mxu2 %v2186_v28  ;;  %v2626_v15 = vsel %vm2487_vm4, %v372_v0, %v376_v42  ;;  %v667_v20 = vsel %vm2502_vm5, %v665_v6, %v666_v7  ;;  %v460_v25 = vunpack.c.l.b16 %v2622_v14  ;;  %v701_v28 = vunpack.c.l.b16 %v664_v18  ;;  %v2171_v42 = vld [vmem:[%s2965_s2 + $0x8] sm:$0xff]  ;;  %v2168_v61 = vld [vmem:[%s2477_s30] sm:$0xff]  ;;  %v2240_v0 = vld [vmem:[%s2965_s2 + $0x230] sm:$0xff] }
  0x2d   : > { %878 = vmatpush.bf16.msra.mxu3 %v2194_v46  ;;  %v2630_v16 = vsel %vm2487_vm4, %v382_v1, %v386_v3  ;;  %v455_v26 = vunpack.c.l.b16 %v2626_v15  ;;  %v702_v29 = vunpack.c.l.b16 %v667_v20  ;;  %v670_v38 = vrot.slane %v2455_v11, 5  ;;  %v2230_v11 = vld [vmem:[%s2965_s2 + $0x1e0] sm:$0xff]  ;;  %v2215_v3 = vld [vmem:[%s2965_s2 + $0x168] sm:$0xff]  ;;  %v2728_v5 = vld [vmem:[%s2449_s13 + $0x18] sm:$0xff] }
  0x2e   : > { %535 = vmatmul.bf16.vlgmr.msra.gmra.mxu1 %v2570_v33  ;;  %525 = vmatmul.bf16.vlgmr.msra.gmra.mxu0 %v461_v39  ;;  %v456_v27 = vunpack.c.l.b16 %v2630_v16  ;;  %v2658_v32 = vpack.c.b16 %v460_v25, %v459_v24  ;;  %v2204_v39 = vld [vmem:[%s2965_s2 + $0x110] sm:$0xff]  ;;  %v673_v46 = vrot.slane %v2458_v12, 5  ;;  %v677_v1 = vrot.slane %v2518_v56, 5  ;;  %v2239_v6 = vld [vmem:[%s2965_s2 + $0x228] sm:$0xff] }
  0x2f   : > { %618 = vmatpush.bf16.msrb.mxu1 %v2177_v23  ;;  %1001 = vmatpush.bf16.msrb.mxu0 %v2209_v34  ;;  %v2222_v23 = vld [vmem:[%s2965_s2 + $0x1a0] sm:$0xff]  ;;  %v2660_v36 = vpack.c.b16 %v702_v29, %v701_v28  ;;  %v672_v44 = vrot.slane %v670_v38, 4  ;;  %v2228_v56 = vld [vmem:[%s2965_s2 + $0x1d0] sm:$0xff]  ;;  %v1815_v7 = vrot.slane %v2495_v45, 9  ;;  %v2227_v18 = vld [vmem:[%s2965_s2 + $0x1c8] sm:$0xff] }
  0x30   : > { %1223 = vmatpush.bf16.msrb.mxu2 %v2225_v37  ;;  %879 = vmatmul.bf16.vlgmr.msra.gmra.mxu3 %v2599_v62  ;;  %v462_v34 = vpack.c.b16 %v456_v27, %v455_v26  ;;  %v2172_v37 = vld [vmem:[%s2965_s2 + $0x10] sm:$0xff]  ;;  %v2238_v45 = vld [vmem:[%s2965_s2 + $0x220] sm:$0xff]  ;;  %v2211_v27 = vld [vmem:[%s2965_s2 + $0x148] sm:$0xff] }
  0x31   : > { %771 = vmatmul.bf16.vlgmr.msra.gmra.mxu2 %v707_v43  ;;  %1353 = vmatpush.bf16.msrb.mxu3 %v2233_v55  ;;  %v1814_v43 = vrot.slane %v2452_v10, 9  ;;  %v2170_v10 = vld [vmem:[%s2965_s2] sm:$0xff]  ;;  %v674_v52 = vsel %vm2502_vm5, %v672_v44, %v673_v46  ;;  %v2212_v24 = vld [vmem:[%s2965_s2 + $0x150] sm:$0xff]  ;;  %v2237_v29 = vld [vmem:[%s2965_s2 + $0x218] sm:$0xff] }
  0x32   : > { %v2202_v55 = vld [vmem:[%s2965_s2 + $0x100] sm:$0xff] }
  0x33   : > { %619 = vmatpush.bf16.msrb.mxu1 %v2176_v50  ;;  %1002 = vmatpush.bf16.msrb.mxu0 %v2208_v57  ;;  %v2229_v50 = vld [vmem:[%s2965_s2 + $0x1d8] sm:$0xff]  ;;  %v671_v12 = vsel %vm2502_vm5, %v1814_v43, %v670_v38  ;;  %v2765_v26 = vld [vmem:[%s2449_s13 + $0x24] sm:$0xff] }
  0x34   : > { %1224 = vmatpush.bf16.msrb.mxu2 %v2224_v59  ;;  %v2241_v57 = vld [vmem:[%s2965_s2 + $0x238] sm:$0xff]  ;;  %v703_v58 = vunpack.c.l.b16 %v671_v12  ;;  %v704_v59 = vunpack.c.l.b16 %v674_v52  ;;  %v2226_v28 = vld [vmem:[%s2965_s2 + $0x1c0] sm:$0xff] }
  0x35   : > { %1354 = vmatpush.bf16.msrb.mxu3 %v2232_v8  ;;  %v679_v8 = vrot.slane %v677_v1, 4  ;;  %v2234_v12 = vld [vmem:[%s2965_s2 + $0x200] sm:$0xff] }
  0x36   : > { %v2715_v63 = vpack.c.b16 %v704_v59, %v703_v58 }
  0x37   : > { %620 = vmatpush.bf16.msrb.mxu1 %v2175_v4  ;;  %1003 = vmatpush.bf16.msrb.mxu0 %v2207_v9  ;;  %v2219_v4 = vld [vmem:[%s2965_s2 + $0x188] sm:$0xff]  ;;  %v680_v9 = vrot.slane %v2553_v19, 5  ;;  %v678_v19 = vsel %vm2502_vm5, %v1815_v7, %v677_v1 }
  0x38   : > { %1225 = vmatpush.bf16.msrb.mxu2 %v2223_v13  ;;  %v2218_v13 = vld [vmem:[%s2965_s2 + $0x180] sm:$0xff] }
  0x39   : > { %1355 = vmatpush.bf16.msrb.mxu3 %v2231_v21  ;;  %v681_v20 = vsel %vm2502_vm5, %v679_v8, %v680_v9  ;;  %v2213_v21 = vld [vmem:[%s2965_s2 + $0x158] sm:$0xff]  ;;  %v320_v9 = vld [vmem:[%s2477_s30 + $0x14] sm:$0x1] }
  0x3b   : > { %621 = vmatpush.bf16.msrb.mxu1 %v2174_v17  ;;  %1004 = vmatpush.bf16.msrb.mxu0 %v2206_v22  ;;  %v2214_v17 = vld [vmem:[%s2965_s2 + $0x160] sm:$0xff]  ;;  %v705_v22 = vunpack.c.l.b16 %v678_v19 }
  0x3c   : > { %1226 = vmatpush.bf16.msrb.mxu2 %v2222_v23  ;;  %v706_v23 = vunpack.c.l.b16 %v681_v20 }
  0x3d   : > { %1356 = vmatpush.bf16.msrb.mxu3 %v2230_v11  ;;  %v2235_v11 = vld [vmem:[%s2965_s2 + $0x208] sm:$0xff] }
  0x3e   : > { %540 = vmatmul.bf16.gmra.mxu1 %v2658_v32  ;;  %530 = vmatmul.bf16.gmra.mxu0 %v462_v34  ;;  %v2762_v25 = vpack.c.b16 %v706_v23, %v705_v22 }
  0x3f   : > { %622 = vmatpush.bf16.msrb.mxu1 %v2173_v30  ;;  %1005 = vmatpush.bf16.msrb.mxu0 %v2205_v31  ;;  %v2780_v30 = vld [vmem:[%s2449_s13 + $0x24] sm:$0xf]  ;;  %v2236_v31 = vld [vmem:[%s2965_s2 + $0x210] sm:$0xff] }
  0x40   : > { %1227 = vmatpush.bf16.msrb.mxu2 %v2221_v41  ;;  %884 = vmatmul.bf16.gmra.mxu3 %v2671_v40  ;;  %v912_v38 = vshll.u32 %v2780_v30, 16 }
  0x41   : > { %776 = vmatmul.bf16.gmra.mxu2 %v2660_v36  ;;  %1357 = vmatpush.bf16.msrb.mxu3 %v2229_v50 }
  0x42   : > { %v914_v43 = vrot.slane %v912_v38, 5 }
  0x43   : > { %623 = vmatpush.bf16.msrb.mxu1 %v2172_v37  ;;  %1006 = vmatpush.bf16.msrb.mxu0 %v2204_v39  ;;  %v909_v37 = vshrl.u32 %v2780_v30, 16 }
  0x44   : > { %1228 = vmatpush.bf16.msrb.mxu2 %v2220_v47  ;;  %v2800_v47 = vld [vmem:[%s2449_s13 + $0x2c] sm:$0x1] }
  0x45   : > { %1358 = vmatpush.bf16.msrb.mxu3 %v2228_v56 }
  0x47   : > { %624 = vmatpush.bf16.msrb.mxu1 %v2171_v42  ;;  %1007 = vmatpush.bf16.msrb.mxu0 %v2203_v49  ;;  %v911_v42 = vrot.slane %v909_v37, 4 }
  0x48   : > { %1229 = vmatpush.bf16.msrb.mxu2 %v2219_v4 }
  0x49   : > { %1359 = vmatpush.bf16.msrb.mxu3 %v2227_v18  ;;  %v915_v49 = vor.u32 %v914_v43, %v911_v42 }
  0x4b   : > { %625 = vmatpush.bf16.msrb.mxu1 %v2170_v10  ;;  %1008 = vmatpush.bf16.msrb.mxu0 %v2202_v55  ;;  %v928_v10 = vshll.u32 %v2800_v47, 16  ;;  %v916_v52 = vrot.slane %v915_v49, 4 }
  0x4c   : > { %1230 = vmatpush.bf16.msrb.mxu2 %v2218_v13  ;;  %v1280_v13 = vshll.u32 %v320_v9, 16 }
  0x4d   : > { %1360 = vmatpush.bf16.msrb.mxu3 %v2226_v28  ;;  %v930_v55 = vrot.slane %v928_v10, 5 }
  0x4e   : > { %626 = vmatmul.bf16.vlgmr.msrb.gmra.mxu1 %v2168_v61  ;;  %1009 = vmatmul.bf16.vlgmr.msrb.gmra.mxu0 %v462_v34  ;;  %v2210_v34 = vld [vmem:[%s2965_s2 + $0x140] sm:$0xff]  ;;  %v319_v61 = vld [vmem:[%s2477_s30 + $0x10] sm:$0xf] }
  0x4f   : > { %1115 = vmatpush.bf16.msra.mxu1 %v2217_v53  ;;  %1467 = vmatpush.bf16.msra.mxu0 %v2241_v57  ;;  %v1274_v4 = vshrl.u32 %v319_v61, 16 }
  0x50   : > { %889 = vmatmul.bf16.gmra.mxu3 %v2728_v5  ;;  %2250 = vmatpush.bf16.msra.mxu2 %v2241_v57 }
  0x51   : > { %781 = vmatmul.bf16.gmra.mxu2 %v2715_v63  ;;  %v1276_v8 = vrot.slane %v1274_v4, 4 }
  0x53   : > { %1116 = vmatpush.bf16.msra.mxu1 %v2216_v60  ;;  %1468 = vmatpush.bf16.msra.mxu0 %v2240_v0 }
  0x54   : > { %2251 = vmatpush.bf16.msra.mxu2 %v2240_v0 }
  0x57   : > { %1117 = vmatpush.bf16.msra.mxu1 %v2215_v3  ;;  %1469 = vmatpush.bf16.msra.mxu0 %v2239_v6  ;;  %v1270_v3 = vshll.u32 %v319_v61, 16 }
  0x58   : > { %2252 = vmatpush.bf16.msra.mxu2 %v2239_v6 }
  0x59   : > { %v1272_v7 = vrot.slane %v1270_v3, 5 }
  0x5b   : > { %1118 = vmatpush.bf16.msra.mxu1 %v2214_v17  ;;  %1470 = vmatpush.bf16.msra.mxu0 %v2238_v45 }
  0x5c   : > { %2253 = vmatpush.bf16.msra.mxu2 %v2238_v45  ;;  %v1282_v45 = vrot.slane %v1280_v13, 5 }
  0x5e   : > { %631 = vmatmul.bf16.gmra.mxu1 %v2599_v62  ;;  %1014 = vmatmul.bf16.gmra.mxu0 %v2570_v33  ;;  %v2783_v62 = vld [vmem:[%s2449_s13 + $0x28] sm:$0xf] }
  0x5f   : > { %1119 = vmatpush.bf16.msra.mxu1 %v2213_v21  ;;  %1471 = vmatpush.bf16.msra.mxu0 %v2237_v29  ;;  %v918_v39 = vshll.u32 %v2783_v62, 16  ;;  %v922_v41 = vshrl.u32 %v2783_v62, 16  ;;  %v1041_v23 = vrot.slane %v2783_v62, 5 }
  0x60   : > { %894 = vmatmul.bf16.gmra.mxu3 %v2765_v26  ;;  %2254 = vmatpush.bf16.msra.mxu2 %v2237_v29  ;;  %v1044_v29 = vrot.slane %v2800_v47, 5 }
  0x61   : > { %786 = vmatmul.bf16.gmra.mxu2 %v2762_v25  ;;  %v920_v44 = vrot.slane %v918_v39, 5  ;;  %v924_v46 = vrot.slane %v922_v41, 4  ;;  %v1043_v28 = vrot.slane %v1041_v23, 4 }
  0x63   : > { %1120 = vmatpush.bf16.msra.mxu1 %v2212_v24  ;;  %1472 = vmatpush.bf16.msra.mxu0 %v2236_v31  ;;  %v925_v50 = vor.u32 %v924_v46, %v920_v44  ;;  %v2812_v57 = vsel %vm2487_vm4, %v916_v52, %v920_v44  ;;  %v1393_v24 = vrot.slane %v319_v61, 5  ;;  %v1045_v62 = vsel %vm2502_vm5, %v1043_v28, %v1044_v29 }
  0x64   : > { %2255 = vmatpush.bf16.msra.mxu2 %v2236_v31  ;;  %v1396_v31 = vrot.slane %v320_v9, 5  ;;  %v1064_v39 = vunpack.c.l.b16 %v1045_v62 }
  0x65   : > { %v926_v53 = vrot.slane %v925_v50, 4 }
  0x67   : > { %1121 = vmatpush.bf16.msra.mxu1 %v2211_v27  ;;  %1473 = vmatpush.bf16.msra.mxu0 %v2235_v11  ;;  %v2816_v58 = vsel %vm2487_vm4, %v926_v53, %v930_v55  ;;  %v1964_v27 = vrot.slane %v2780_v30, 9 }
  0x68   : > { %2256 = vmatpush.bf16.msra.mxu2 %v2235_v11  ;;  %v950_v59 = vunpack.c.l.b16 %v2816_v58 }
  0x69   : > { %v1042_v37 = vsel %vm2502_vm5, %v1964_v27, %v1041_v23 }
  0x6a   : > { %v1063_v30 = vunpack.c.l.b16 %v1042_v37 }
  0x6b   : > { %1122 = vmatpush.bf16.msra.mxu1 %v2210_v34  ;;  %1474 = vmatpush.bf16.msra.mxu0 %v2234_v12  ;;  %v1395_v34 = vrot.slane %v1393_v24, 4 }
  0x6c   : > { %2257 = vmatpush.bf16.msra.mxu2 %v2234_v12  ;;  %v1065_v42 = vpack.c.b16 %v1064_v39, %v1063_v30 }
  0x6d   : > { %v1397_v38 = vsel %vm2502_vm5, %v1395_v34, %v1396_v31 }
  0x6e   : > { %636 = vmatmul.bf16.gmra.mxu1 %v2671_v40  ;;  %1019 = vmatmul.bf16.gmra.mxu0 %v2658_v32  ;;  %v1416_v11 = vunpack.c.l.b16 %v1397_v38 }
  0x70   : > { %1361 = vmatmul.bf16.vlgmr.msrb.gmra.mxu3 %v2570_v33  ;;  %v318_v33 = vld [vmem:[%s2477_s30 + $0xc] sm:$0xf] }
  0x71   : > { %1231 = vmatmul.bf16.vlgmr.msrb.gmra.mxu2 %v2671_v40  ;;  %v949_v40 = vunpack.c.l.b16 %v2812_v57  ;;  %v1261_v0 = vshrl.u32 %v318_v33, 16  ;;  %v1264_v1 = vshll.u32 %v318_v33, 16  ;;  %v2113_v35 = vrot.slane %v318_v33, 9 }
  0x73   : > { %v951_v60 = vpack.c.b16 %v950_v59, %v949_v40  ;;  %v1263_v56 = vrot.slane %v1261_v0, 4  ;;  %v1266_v6 = vrot.slane %v1264_v1, 5 }
  0x7e   : > { %641 = vmatmul.bf16.gmra.mxu1 %v2728_v5  ;;  %1024 = vmatmul.bf16.gmra.mxu0 %v951_v60 }
  0x80   : > { %1366 = vmatmul.bf16.gmra.mxu3 %v2658_v32  ;;  %v1277_v32 = vor.u32 %v1276_v8, %v1272_v7 }
  0x81   : > { %1236 = vmatmul.bf16.gmra.mxu2 %v2728_v5  ;;  %v1267_v5 = vor.u32 %v1266_v6, %v1263_v56 }
  0x82   : > { %v1278_v18 = vrot.slane %v1277_v32, 4 }
  0x83   : > { %v1268_v17 = vrot.slane %v1267_v5, 4 }
  0x84   : > { %v1283_v20 = vsel %vm2487_vm4, %v1278_v18, %v1282_v45 }
  0x85   : > { %v1273_v19 = vsel %vm2487_vm4, %v1268_v17, %v1272_v7  ;;  %v1302_v22 = vunpack.c.l.b16 %v1283_v20 }
  0x86   : > { %v1301_v21 = vunpack.c.l.b16 %v1273_v19 }
  0x8e   : > { %1123 = vmatmul.bf16.vlgmr.msra.gmra.mxu1 %v2660_v36  ;;  %1475 = vmatmul.bf16.vlgmr.msra.gmra.mxu0 %v2715_v63  ;;  %v2169_v36 = vld [vmem:[%s2477_s30 + $0xc] sm:$0xff] }
  0x90   : > { %1371 = vmatmul.bf16.gmra.mxu3 %v951_v60 }
  0x91   : > { %1241 = vmatmul.bf16.gmra.mxu2 %v2765_v26  ;;  %v1303_v26 = vpack.c.b16 %v1302_v22, %v1301_v21 }
  0x9e   : > { %1128 = vmatmul.bf16.gmra.mxu1 %v2715_v63  ;;  %1480 = vmatmul.bf16.gmra.mxu0 %v2762_v25  ;;  %v1394_v63 = vsel %vm2502_vm5, %v2113_v35, %v1393_v24 }
  0x9f   : > { %v1415_v41 = vunpack.c.l.b16 %v1394_v63 }
  0xa0   : > { %1376 = vmatmul.bf16.gmra.mxu3 %v1303_v26 }
  0xa1   : > { %1246 = vmatmul.bf16.gmra.mxu2 %v2169_v36  ;;  %v1417_v46 = vpack.c.b16 %v1416_v11, %v1415_v41 }
  0xab   : > { %v536_v43 = vpop.f32.mrf.mxu1  ;;  %v526_v44 = vpop.f32.mrf.mxu0 }
  0xae   : > { %1133 = vmatmul.bf16.gmra.mxu1 %v2762_v25  ;;  %1485 = vmatmul.bf16.gmra.mxu0 %v1065_v42 }
  0xb1   : > { %1490 = vmatmul.bf16.vlgmr.msra.gmra.mxu2 %v1417_v46 }
  0xb3   : > { %v538_v49 = vpop.f32.mrf.mxu1  ;;  %v528_v50 = vpop.f32.mrf.mxu0 }
  0xb4   : > { %v772_v47 = vpop.f32.mrf.mxu2  ;;  %v880_v10 = vpop.f32.mrf.mxu3 }
  0xbb   : > { %v541_v52 = vpop.f32.mrf.mxu1  ;;  %v531_v48 = vpop.f32.mrf.mxu0 }
  0xbc   : > { %v774_v12 = vpop.f32.mrf.mxu2  ;;  %v882_v53 = vpop.f32.mrf.mxu3 }
  0xbe   : > { %1138 = vmatmul.bf16.gmra.mxu1 %v1065_v42 }
  0xc3   : > { %v543_v40 = vpop.f32.mrf.mxu1  ;;  %v533_v59 = vpop.f32.mrf.mxu0 }
  0xc4   : > { %v777_v55 = vpop.f32.mrf.mxu2  ;;  %v2848_v60 = vpop.f32.mrf.mxu3 }
  0xcb   : > { %v627_v61 = vpop.f32.mrf.mxu1  ;;  %v1010_v0 = vpop.f32.mrf.mxu0 }
  0xcc   : > { %v779_v33 = vpop.f32.mrf.mxu2  ;;  %v628_v25 = vadd.f32 %v627_v61, %v526_v44  ;;  %v2850_v3 = vpop.f32.mrf.mxu3 }
  0xce   : > { %v792_v1 = vadd.f32 %v772_v47, %v628_v25 }
  0xd3   : > { %v629_v56 = vpop.f32.mrf.mxu1  ;;  %v1012_v6 = vpop.f32.mrf.mxu0 }
  0xd4   : > { %v782_v4 = vpop.f32.mrf.mxu2  ;;  %v630_v7 = vadd.f32 %v629_v56, %v528_v50  ;;  %v2852_v9 = vpop.f32.mrf.mxu3  ;;  %v2885_v56 = vld [vmem:[%s2966_s3] ss:$0 sm:$0xff] }
  0xd6   : > { %v793_v8 = vadd.f32 %v774_v12, %v630_v7 }
  0xdb   : > { %v632_v32 = vpop.f32.mrf.mxu1  ;;  %v2854_v13 = vpop.f32.mrf.mxu0 }
  0xdc   : > { %v784_v5 = vpop.f32.mrf.mxu2  ;;  %v633_v17 = vadd.f32 %v632_v32, %v531_v48  ;;  %v2856_v19 = vpop.f32.mrf.mxu3 }
  0xde   : > { %v794_v18 = vadd.f32 %v777_v55, %v633_v17 }
  0xe0   : > { %v902_v32 = vadd.f32 %v2848_v60, %v794_v18 }
  0xe3   : > { %v634_v20 = vpop.f32.mrf.mxu1  ;;  %v2858_v21 = vpop.f32.mrf.mxu0 }
  0xe4   : > { %v787_v45 = vpop.f32.mrf.mxu2  ;;  %v635_v22 = vadd.f32 %v634_v20, %v533_v59  ;;  %v2864_v28 = vpop.f32.mrf.mxu3 }
  0xe6   : > { %v2860_v36 = vadd.f32 %v779_v33, %v635_v22 }
  0xeb   : > { %v637_v24 = vpop.f32.mrf.mxu1  ;;  %v2862_v26 = vpop.f32.mrf.mxu0 }
  0xec   : > { %v789_v23 = vpop.f32.mrf.mxu2  ;;  %v638_v27 = vadd.f32 %v637_v24, %v536_v43  ;;  %v2872_v63 = vpop.f32.mrf.mxu3  ;;  %v1032_v24 = vadd.f32 %v2854_v13, %v902_v32 }
  0xee   : > { %v2866_v29 = vadd.f32 %v782_v4, %v638_v27 }
  0xf3   : > { %v639_v35 = vpop.f32.mrf.mxu1  ;;  %v2868_v34 = vpop.f32.mrf.mxu0 }
  0xf4   : > { %v1232_v31 = vpop.f32.mrf.mxu2  ;;  %v640_v37 = vadd.f32 %v639_v35, %v538_v49  ;;  %v1362_v42 = vpop.f32.mrf.mxu3  ;;  %v900_v49 = vadd.f32 %v880_v10, %v792_v1 }
  0xf6   : > { %v2870_v62 = vadd.f32 %v784_v5, %v640_v37  ;;  %v1030_v12 = vadd.f32 %v1010_v0, %v900_v49  ;;  %v2892_v0 = vld [vmem:[%s2967_s4] ss:$0 sm:$0xff] }
  0xfb   : > { %v642_v30 = vpop.f32.mrf.mxu1  ;;  %v2874_v39 = vpop.f32.mrf.mxu0 }
  0xfc   : > { %v1234_v38 = vpop.f32.mrf.mxu2  ;;  %v643_v41 = vadd.f32 %v642_v30, %v541_v52  ;;  %v1364_v48 = vpop.f32.mrf.mxu3  ;;  %v901_v52 = vadd.f32 %v882_v53, %v793_v8 }
  0xfe   : > { %v2876_v11 = vadd.f32 %v787_v45, %v643_v41  ;;  %v1561_v41 = vunpack.c.l.bf16 %v2630_v16 }
 0x103   : > { %v644_v44 = vpop.f32.mrf.mxu1  ;;  %v2878_v46 = vpop.f32.mrf.mxu0 }
 0x104   : > { %v1237_v43 = vpop.f32.mrf.mxu2  ;;  %v645_v47 = vadd.f32 %v644_v44, %v543_v40  ;;  %v1031_v40 = vadd.f32 %v1012_v6, %v901_v52  ;;  %v1367_v5 = vpop.f32.mrf.mxu3  ;;  %v1560_v6 = vunpack.c.l.bf16 %v2626_v15 }
 0x106   : > { %v2880_v50 = vadd.f32 %v789_v23, %v645_v47 }
 0x10b   : > { %v1124_v55 = vpop.f32.mrf.mxu1  ;;  %v1476_v59 = vpop.f32.mrf.mxu0 }
 0x10c   : > { %v1144_v33 = vadd.f32 %v1124_v55, %v1030_v12  ;;  %v1239_v61 = vpop.f32.mrf.mxu2 }
 0x10e   : > { %v1252_v25 = vadd.f32 %v1232_v31, %v1144_v33 }
 0x110   : > { %v1382_v4 = vadd.f32 %v1362_v42, %v1252_v25  ;;  %v1369_v42 = vpop.f32.mrf.mxu3 }
 0x112   : > { %v1496_v10 = vadd.f32 %v1476_v59, %v1382_v4  ;;  %v1562_v4 = vunpack.c.l.bf16 %v2511_v51  ;;  %v905_v51 = vadd.f32 %v2856_v19, %v2870_v62  ;;  %v906_v62 = vadd.f32 %v2864_v28, %v2876_v11 }
 0x113   : > { %v1126_v1 = vpop.f32.mrf.mxu1  ;;  %v1478_v7 = vpop.f32.mrf.mxu0  ;;  %v907_v11 = vadd.f32 %v2872_v63, %v2880_v50 }
 0x114   : > { %v1508_v53 = vmul.f32 %v2885_v56, %v1496_v10  ;;  %v1145_v8 = vadd.f32 %v1126_v1, %v1031_v40  ;;  %v1242_v20 = vpop.f32.mrf.mxu2 }
 0x116   : > { %v1520_v17 = vadd.f32 %v2892_v0, %v1508_v53  ;;  %v1253_v45 = vadd.f32 %v1234_v38, %v1145_v8  ;;  %v903_v38 = vadd.f32 %v2850_v3, %v2860_v36 }
 0x118   : > { %vm1528_vm6 = vcmp.gt.f32.partialorder %v1520_v17, 0.0  ;;  %v1536_v22 = vmul.f32 0.2, %v1520_v17  ;;  %v1383_v23 = vadd.f32 %v1364_v48, %v1253_v45  ;;  %v1033_v12 = vadd.f32 %v2858_v21, %v903_v38  ;;  %v1372_v10 = vpop.f32.mrf.mxu3 }
 0x11a   : > { %v1544_v27 = vsel %vm1528_vm6, %v1520_v17, %v1536_v22  ;;  %v1497_v60 = vadd.f32 %v1478_v7, %v1383_v23  ;;  %v1035_v23 = vadd.f32 %v2868_v34, %v905_v51 }
 0x11b   : > { %v1568_v18 = vadd.f32 %v1560_v6, %v1544_v27  ;;  %v1129_v31 = vpop.f32.mrf.mxu1  ;;  %v1481_v35 = vpop.f32.mrf.mxu0  ;;  %v1563_v6 = vunpack.c.l.bf16 %v2515_v54 }
 0x11c   : > { %v1509_v15 = vmul.f32 %v2885_v56, %v1497_v60  ;;  %v1146_v37 = vadd.f32 %v1129_v31, %v1032_v24  ;;  %v1244_v49 = vpop.f32.mrf.mxu2 }
 0x11d   : > { %1576 = vst [vmem:[%s2902_s25] sm:$0xff] %v1568_v18 }
 0x11e   : > { %v1521_v13 = vadd.f32 %v2892_v0, %v1509_v15  ;;  %v1254_v30 = vadd.f32 %v1237_v43, %v1146_v37  ;;  %v904_v43 = vadd.f32 %v2852_v9, %v2866_v29  ;;  %v1564_v37 = vunpack.c.l.bf16 %v2618_v2 }
 0x120   : > { %vm1529_vm7 = vcmp.gt.f32.partialorder %v1521_v13, 0.0  ;;  %v1537_v44 = vmul.f32 0.2, %v1521_v13  ;;  %v1384_v47 = vadd.f32 %v1367_v5, %v1254_v30  ;;  %v1034_v1 = vadd.f32 %v2862_v26, %v904_v43  ;;  %v1374_v18 = vpop.f32.mrf.mxu3 }
 0x121   : > { %v1036_v30 = vadd.f32 %v2874_v39, %v906_v62 }
 0x122   : > { %v1545_v48 = vsel %vm1529_vm7, %v1521_v13, %v1537_v44  ;;  %v1498_v55 = vadd.f32 %v1481_v35, %v1384_v47 }
 0x123   : > { %v1569_v59 = vadd.f32 %v1561_v41, %v1545_v48  ;;  %v1131_v33 = vpop.f32.mrf.mxu1  ;;  %v1483_v52 = vpop.f32.mrf.mxu0 }
 0x124   : > { %v1510_v3 = vmul.f32 %v2885_v56, %v1498_v55  ;;  %v1147_v36 = vadd.f32 %v1131_v33, %v1033_v12  ;;  %v1247_v5 = vpop.f32.mrf.mxu2  ;;  %v1565_v55 = vunpack.c.l.bf16 %v2622_v14  ;;  %v1566_v14 = vunpack.c.l.bf16 %v2812_v57 }
 0x125   : > { %1577 = vst [vmem:[%s2902_s25 + $0x8] sm:$0xff] %v1569_v59 }
 0x126   : > { %v1522_v16 = vadd.f32 %v2892_v0, %v1510_v3  ;;  %v1255_v25 = vadd.f32 %v1239_v61, %v1147_v36 }
 0x128   : > { %vm1530_vm8 = vcmp.gt.f32.partialorder %v1522_v16, 0.0  ;;  %v1538_v21 = vmul.f32 0.2, %v1522_v16  ;;  %v1385_v40 = vadd.f32 %v1369_v42, %v1255_v25  ;;  %v1377_v28 = vpop.f32.mrf.mxu3 }
 0x12a   : > { %v1546_v7 = vsel %vm1530_vm8, %v1522_v16, %v1538_v21  ;;  %v1499_v53 = vadd.f32 %v1483_v52, %v1385_v40  ;;  %v1037_v52 = vadd.f32 %v2878_v46, %v907_v11 }
 0x12b   : > { %v1570_v8 = vadd.f32 %v1562_v4, %v1546_v7  ;;  %v1134_v32 = vpop.f32.mrf.mxu1  ;;  %v1486_v29 = vpop.f32.mrf.mxu0 }
 0x12c   : > { %v1511_v17 = vmul.f32 %v2885_v56, %v1499_v53  ;;  %v1148_v9 = vadd.f32 %v1134_v32, %v1034_v1  ;;  %v1249_v19 = vpop.f32.mrf.mxu2  ;;  %v1567_v32 = vunpack.c.l.bf16 %v2816_v58 }
 0x12d   : > { %1578 = vst [vmem:[%s2902_s25 + $0x10] sm:$0xff] %v1570_v8 }
 0x12e   : > { %v1523_v61 = vadd.f32 %v2892_v0, %v1511_v17  ;;  %v1256_v45 = vadd.f32 %v1242_v20, %v1148_v9 }
 0x130   : > { %vm1531_vm9 = vcmp.gt.f32.partialorder %v1523_v61, 0.0  ;;  %v1539_v26 = vmul.f32 0.2, %v1523_v61  ;;  %v1386_v22 = vadd.f32 %v1372_v10, %v1256_v45  ;;  %v1379_v21 = vpop.f32.mrf.mxu3 }
 0x132   : > { %v1547_v24 = vsel %vm1531_vm9, %v1523_v61, %v1539_v26  ;;  %v1500_v27 = vadd.f32 %v1486_v29, %v1386_v22 }
 0x133   : > { %v1571_v60 = vadd.f32 %v1563_v6, %v1547_v24  ;;  %v1136_v31 = vpop.f32.mrf.mxu1  ;;  %v1488_v34 = vpop.f32.mrf.mxu0 }
 0x134   : > { %v1512_v35 = vmul.f32 %v2885_v56, %v1500_v27  ;;  %v1149_v15 = vadd.f32 %v1136_v31, %v1035_v23  ;;  %v1491_v59 = vpop.f32.mrf.mxu2 }
 0x135   : > { %1579 = vst [vmem:[%s2902_s25 + $0x18] sm:$0xff] %v1571_v60 }
 0x136   : > { %v1524_v54 = vadd.f32 %v2892_v0, %v1512_v35  ;;  %v1257_v20 = vadd.f32 %v1244_v49, %v1149_v15 }
 0x138   : > { %vm1532_vm10 = vcmp.gt.f32.partialorder %v1524_v54, 0.0  ;;  %v1540_v38 = vmul.f32 0.2, %v1524_v54  ;;  %v1387_v13 = vadd.f32 %v1374_v18, %v1257_v20 }
 0x13a   : > { %v1548_v41 = vsel %vm1532_vm10, %v1524_v54, %v1540_v38  ;;  %v1501_v42 = vadd.f32 %v1488_v34, %v1387_v13 }
 0x13b   : > { %v1572_v44 = vadd.f32 %v1564_v37, %v1548_v41  ;;  %v1139_v47 = vpop.f32.mrf.mxu1 }
 0x13c   : > { %v1513_v12 = vmul.f32 %v2885_v56, %v1501_v42  ;;  %v1150_v48 = vadd.f32 %v1139_v47, %v1036_v30  ;;  %v1493_v46 = vpop.f32.mrf.mxu2 }
 0x13d   : > { %1580 = vst [vmem:[%s2902_s25 + $0x20] sm:$0xff] %v1572_v44 }
 0x13e   : > { %v1525_v2 = vadd.f32 %v2892_v0, %v1513_v12  ;;  %v1258_v49 = vadd.f32 %v1247_v5, %v1150_v48 }
 0x140   : > { %vm1533_vm11 = vcmp.gt.f32.partialorder %v1525_v2, 0.0  ;;  %v1541_v39 = vmul.f32 0.2, %v1525_v2  ;;  %v1388_v33 = vadd.f32 %v1377_v28, %v1258_v49 }
 0x142   : > { %v1549_v3 = vsel %vm1533_vm11, %v1525_v2, %v1541_v39  ;;  %v1502_v36 = vadd.f32 %v1491_v59, %v1388_v33 }
 0x143   : > { %v1573_v43 = vadd.f32 %v1565_v55, %v1549_v3  ;;  %v1141_v16 = vpop.f32.mrf.mxu1 }
 0x144   : > { %v1514_v25 = vmul.f32 %v2885_v56, %v1502_v36  ;;  %v1151_v4 = vadd.f32 %v1141_v16, %v1037_v52 }
 0x145   : > { %1581 = vst [vmem:[%s2902_s25 + $0x28] sm:$0xff] %v1573_v43 }
 0x146   : > { %v1526_v63 = vadd.f32 %v2892_v0, %v1514_v25  ;;  %v1259_v50 = vadd.f32 %v1249_v19, %v1151_v4 }
 0x148   : > { %vm1534_vm12 = vcmp.gt.f32.partialorder %v1526_v63, 0.0  ;;  %v1542_v40 = vmul.f32 0.2, %v1526_v63  ;;  %v1389_v10 = vadd.f32 %v1379_v21, %v1259_v50 }
 0x14a   : > { %v1550_v1 = vsel %vm1534_vm12, %v1526_v63, %v1542_v40  ;;  %v1503_v7 = vadd.f32 %v1493_v46, %v1389_v10 }
 0x14b   : > { %v1574_v53 = vadd.f32 %v1566_v14, %v1550_v1 }
 0x14c   : > { %v1515_v8 = vmul.f32 %v2885_v56, %v1503_v7 }
 0x14d   : > { %1582 = vst [vmem:[%s2902_s25 + $0x30] sm:$0xff] %v1574_v53 }
 0x14e   : > { %v1527_v5 = vadd.f32 %v2892_v0, %v1515_v8 }
 0x150   : > { %vm1535_vm13 = vcmp.gt.f32.partialorder %v1527_v5, 0.0  ;;  %v1543_v17 = vmul.f32 0.2, %v1527_v5 }
 0x152   : > { %v1551_v9 = vsel %vm1535_vm13, %v1527_v5, %v1543_v17 }
 0x153   : > { %v1575_v57 = vadd.f32 %v1567_v32, %v1551_v9 }
 0x155   : > { %1583 = vst [vmem:[%s2902_s25 + $0x38] sm:$0xff] %v1575_v57 }
 0x156 PF: > { %s15_s22 = sadd.s32 1, %s2342_s22   ;;  %s2973_s18 = smov %s2334_s20 }
 0x157   : > { %p12_p8 = scmp.ge.s32.totalorder %s15_s22, 10   ;;  %s2974_s19 = smov %s2338_s21 }
 0x158   : > { %s2975_s20 = smov %s2978_s23  ;;  %s2976_s21 = smov %s2982_s24 }
 0x159   :  { %14 = sbr.rel (!%p12_p8) target bundleno = 3 (0x3), region = 81 }

</bundles_post_ra>
